<compile_context>
chip_gen: v7x
topology: tpu7x:2x2x1
jax: 0.10.0
libtpu: 0.0.40
codegen_flags: <defaults>
</compile_context>

<pallas_src>
import numpy as np

import jax
import jax.numpy as jnp
from jax import lax
from jax.experimental import pallas as pl
from jax.experimental.pallas import tpu as pltpu


_TB_MIN = 8     # f32 sublane count: keeps all in-kernel reshapes layout-trivial
_TB_MAX = 128   # keeps per-tile working set ~10 MiB, far below v7x's 64 MiB VMEM


def _round_up(a, m):
    return ((a + m - 1) // m) * m


# ------------------------------ fused kernel --------------------------------

def _lenet_kernel(x_ref, c1m_ref, c1b_ref, s1e_ref, c2m_ref, c2b_ref, s2e_ref,
                  f1w_ref, f1b_ref, f2w_ref, f2b_ref, f3w_ref, f3b_ref,
                  out_ref):
    f32 = jnp.float32
    bf16 = jnp.bfloat16
    tb = x_ref.shape[2]                                   # batch tile (static)

    x = x_ref[0].astype(f32)                              # [28, tb, 28] (H, n, W)

    # ---- conv1 (3x3, 1->6) + bias + relu: single K-merged band matmul -------
    # operand column = dy*28 + w ; output column = c*26 + w_out
    xc = jnp.concatenate(
        [x[dy:dy + 26].reshape(26 * tb, 28) for dy in range(3)], axis=-1)
    y1 = jnp.dot(xc.astype(bf16), c1m_ref[...], preferred_element_type=f32)
    y1 = jnp.maximum(y1 + c1b_ref[...], 0.0)              # [26*tb, 156]

    # ---- max_pool 2x2 (26x26 -> 13x13) --------------------------------------
    u = y1.reshape(13, 2 * tb, 6 * 26)                    # rows (2i,2i+1) share a slab
    t = jnp.maximum(u[:, 0:tb, :], u[:, tb:2 * tb, :]).reshape(13 * tb, 6 * 26)
    # neighbour-in-W max via a lane roll (slice+concat); wrapped last column
    # per channel is never picked by the even-selection matrix s1e.
    nb = jnp.concatenate([t[:, 1:], t[:, :1]], axis=-1)
    tm = jnp.maximum(t, nb)
    p1 = jnp.dot(tm.astype(bf16), s1e_ref[...], preferred_element_type=f32)
    # p1: [13*tb, 6*13], row = i*tb + n, col = c*13 + j

    # ---- conv2 (3x3, 6->16) + bias + relu: single K-merged band matmul ------
    p1_3 = p1.reshape(13, tb, 6 * 13)
    pc = jnp.concatenate(
        [p1_3[dy:dy + 11].reshape(11 * tb, 6 * 13) for dy in range(3)], axis=-1)
    y2 = jnp.dot(pc.astype(bf16), c2m_ref[...], preferred_element_type=f32)
    y2 = jnp.maximum(y2 + c2b_ref[...], 0.0)              # [11*tb, 176]

    # ---- max_pool 2x2 (11x11 -> 5x5, floor mode) ----------------------------
    v = y2.reshape(11, tb, 16 * 11)[0:10].reshape(5, 2 * tb, 16 * 11)
    t2 = jnp.maximum(v[:, 0:tb, :], v[:, tb:2 * tb, :]).reshape(5 * tb, 16 * 11)
    nb2 = jnp.concatenate([t2[:, 1:], t2[:, :1]], axis=-1)
    tm2 = jnp.maximum(t2, nb2)
    p2 = jnp.dot(tm2.astype(bf16), s2e_ref[...], preferred_element_type=f32)
    # p2: [5*tb, 16*5], row = io*tb + n, col = c2*5 + jo

    # ---- fc1 (400->120) + relu; PyTorch (C,H,W) flatten folded into f1w -----
    p2_3 = p2.reshape(5, tb, 16 * 5)
    xf = jnp.concatenate([p2_3[io] for io in range(5)], axis=-1)   # [tb, 400]
    h1 = jnp.dot(xf.astype(bf16), f1w_ref[...], preferred_element_type=f32)
    h1 = jnp.maximum(h1 + f1b_ref[...], 0.0)

    # ---- fc2 (120->84) + relu ------------------------------------------------
    h2 = jnp.dot(h1.astype(bf16), f2w_ref[...], preferred_element_type=f32)
    h2 = jnp.maximum(h2 + f2b_ref[...], 0.0)

    # ---- fc3 (84->10, padded to 128 lanes) + log_softmax ---------------------
    # pad lanes carry bias -1e9 -> exp underflows to 0, so the softmax only
    # sees the 10 real logits; wrapper slices [:, :10].
    logits = jnp.dot(h2.astype(bf16), f3w_ref[...],
                     preferred_element_type=f32) + f3b_ref[...]   # [tb, 128]
    m = jnp.max(logits, axis=-1, keepdims=True)
    z = logits - m
    lse = jnp.log(jnp.sum(jnp.exp(z), axis=-1, keepdims=True))
    out_ref[...] = (z - lse).astype(out_ref.dtype)


# ------------------------- one-time parameter prep ---------------------------

def _conv_band_matrix(w, in_len, out_len):
    """PyTorch conv weight [Cout,Cin,3,3] -> K-merged band matrix
    [3*Cin*in_len, Cout*out_len] so a valid 3x3 conv along W is ONE matmul on a
    lane-concatenated [H*TB, 3*Cin*in_len] operand."""
    cout, cin, kh, kw = w.shape
    e = np.zeros((kw, in_len, out_len), np.float32)
    for dx in range(kw):
        e[dx, dx:dx + out_len, :] += np.eye(out_len, dtype=np.float32)
    b = jnp.einsum('xkj,ucyx->yckuj', jnp.asarray(e), w)
    return b.reshape(kh * cin * in_len, cout * out_len)


def _pool_even_select(ch, w_in, w_out):
    """One-hot [ch*w_in, ch*w_out] matrix selecting even W columns."""
    se = np.zeros((ch * w_in, ch * w_out), np.float32)
    for c in range(ch):
        for j in range(w_out):
            se[c * w_in + 2 * j, c * w_out + j] = 1.0
    return jnp.asarray(se)


def prepare_params(p):
    """Convert PyTorch-layout params into kernel layout ONCE (bf16 MXU weights)."""
    bf16 = jnp.bfloat16
    # fc1 weight regrouped so the PyTorch (C,H,W) flatten order is baked in:
    # f1w[io*80 + c2*5 + jo, o] = fc1_w[o, c2*25 + io*5 + jo]
    f1w = jnp.transpose(p["fc1_w"].reshape(120, 16, 5, 5),
                        (2, 1, 3, 0)).reshape(400, 120)
    f3w = jnp.zeros((84, 128), jnp.float32).at[:, :10].set(p["fc3_w"].T)
    f3b = jnp.full((128,), -1e9, jnp.float32).at[:10].set(p["fc3_b"])
    return {
        "c1m": _conv_band_matrix(p["conv1_w"], 28, 26).astype(bf16),  # [84, 156]
        "c1b": jnp.repeat(p["conv1_b"], 26)[None, :],                 # [1, 156] f32
        "s1e": _pool_even_select(6, 26, 13).astype(bf16),             # [156, 78]
        "c2m": _conv_band_matrix(p["conv2_w"], 13, 11).astype(bf16),  # [234, 176]
        "c2b": jnp.repeat(p["conv2_b"], 11)[None, :],                 # [1, 176]
        "s2e": _pool_even_select(16, 11, 5).astype(bf16),             # [176, 80]
        "f1w": f1w.astype(bf16),                                      # [400, 120]
        "f1b": p["fc1_b"][None, :],                                   # [1, 120]
        "f2w": p["fc2_w"].T.astype(bf16),                             # [120, 84]
        "f2b": p["fc2_b"][None, :],                                   # [1, 84]
        "f3w": f3w.astype(bf16),                                      # [84, 128] lane-dense
        "f3b": f3b[None, :],                                          # [1, 128]
    }


# ------------------------------- forward pass --------------------------------

@jax.jit
def net_forward(x_nchw, kp):
    n = x_nchw.shape[0]
    # batch tile: multiple of 8, <=128, and (when possible) >=2 grid steps so
    # v7x's two TensorCores both get work via the "parallel" batch axis.
    tb = min(_TB_MAX, max(_TB_MIN, _round_up((n + 1) // 2, _TB_MIN)))
    npad = _round_up(n, tb)
    g = npad // tb

    x = x_nchw[:, 0, :, :].astype(jnp.bfloat16)           # [N, 28, 28], bf16 DMA
    if npad != n:
        x = jnp.pad(x, ((0, npad - n), (0, 0), (0, 0)))
    # batch-tile outermost -> each grid step's x block is one contiguous DMA
    xk = jnp.transpose(x.reshape(g, tb, 28, 28), (0, 2, 1, 3))   # [G, 28, tb, 28]

    def _full(a):
        zeros = (0,) * a.ndim
        return pl.BlockSpec(a.shape, lambda b: zeros)

    names = ["c1m", "c1b", "s1e", "c2m", "c2b", "s2e",
             "f1w", "f1b", "f2w", "f2b", "f3w", "f3b"]
    weights = [kp[k] for k in names]

    out = pl.pallas_call(
        _lenet_kernel,
        out_shape=jax.ShapeDtypeStruct((npad, 128), jnp.float32),  # lane-dense
        grid=(g,),
        in_specs=[pl.BlockSpec((1, 28, tb, 28), lambda b: (b, 0, 0, 0))]
                 + [_full(w) for w in weights],
        out_specs=pl.BlockSpec((tb, 128), lambda b: (b, 0)),
        compiler_params=pltpu.CompilerParams(
            dimension_semantics=("parallel",),
            vmem_limit_bytes=48 * 1024 * 1024,
        ),
    )(xk, *weights)
    return out[:n, :10]


# ------------------------------ reference & init -----------------------------

def init_params(key):
    ks = jax.random.split(key, 10)
    s = 0.1
    p = {}
    # PyTorch-style layouts: conv [Cout, Cin, KH, KW], linear [out, in]
    p["conv1_w"] = s * jax.random.normal(ks[0], (6, 1, 3, 3), jnp.float32)
    p["conv1_b"] = s * jax.random.normal(ks[1], (6,), jnp.float32)
    p["conv2_w"] = s * jax.random.normal(ks[2], (16, 6, 3, 3), jnp.float32)
    p["conv2_b"] = s * jax.random.normal(ks[3], (16,), jnp.float32)
    p["fc1_w"] = s * jax.random.normal(ks[4], (120, 400), jnp.float32)
    p["fc1_b"] = s * jax.random.normal(ks[5], (120,), jnp.float32)
    p["fc2_w"] = s * jax.random.normal(ks[6], (84, 120), jnp.float32)
    p["fc2_b"] = s * jax.random.normal(ks[7], (84,), jnp.float32)
    p["fc3_w"] = s * jax.random.normal(ks[8], (10, 84), jnp.float32)
    p["fc3_b"] = s * jax.random.normal(ks[9], (10,), jnp.float32)
    return p


def _reference_forward(x, p):
    """Pure-JAX replica of the PyTorch Net.forward (numeric self-check)."""
    dn = ("NCHW", "OIHW", "NCHW")
    y = lax.conv_general_dilated(x, p["conv1_w"], (1, 1), "VALID",
                                 dimension_numbers=dn)
    y = jax.nn.relu(y + p["conv1_b"][None, :, None, None])
    y = lax.reduce_window(y, -jnp.inf, lax.max, (1, 1, 2, 2), (1, 1, 2, 2), "VALID")
    y = lax.conv_general_dilated(y, p["conv2_w"], (1, 1), "VALID",
                                 dimension_numbers=dn)
    y = jax.nn.relu(y + p["conv2_b"][None, :, None, None])
    y = lax.reduce_window(y, -jnp.inf, lax.max, (1, 1, 2, 2), (1, 1, 2, 2), "VALID")
    y = y.reshape(y.shape[0], -1)                          # PyTorch (C,H,W) flatten
    y = jax.nn.relu(y @ p["fc1_w"].T + p["fc1_b"])
    y = jax.nn.relu(y @ p["fc2_w"].T + p["fc2_b"])
    y = y @ p["fc3_w"].T + p["fc3_b"]
    return jax.nn.log_softmax(y, axis=1)


def _check(x, params, kparams):
    out = net_forward(x, kparams)
    jax.block_until_ready(out)
    assert out.shape == (x.shape[0], 10)
    # rows of log_softmax must exp-sum to 1
    assert bool(jnp.allclose(jnp.sum(jnp.exp(out), axis=1), 1.0, atol=1e-4))
    # match the pure-JAX f32 reference (loose tol: bf16 MXU operands)
    ref = _reference_forward(x, params)
    assert bool(jnp.allclose(jnp.exp(out), jnp.exp(ref), atol=3e-2)), \
        "kernel output deviates from reference"


# ----------------------------------- main ------------------------------------

if __name__ == "__main__":
    key = jax.random.PRNGKey(0)
    k_x, k_x2, k_p = jax.random.split(key, 3)
    params = init_params(k_p)
    kparams = prepare_params(params)        # one-time layout prep

    # 28x28 input is required by the module (fc1 expects 16*5*5 = 400 features)
    x = jax.random.normal(k_x, (2, 1, 28, 28), jnp.float32)
    _check(x, params, kparams)

    # second shape exercises batch padding + a multi-step ("parallel") grid
    x2 = jax.random.normal(k_x2, (20, 1, 28, 28), jnp.float32)
    _check(x2, params, kparams)

    print("KERNEL_OK")
</pallas_src>

<mosaic_0001>
module attributes {stable_mosaic.version = 11 : i64} {
  func.func @_lenet_kernel(%arg0: i32, %arg1: memref<1x28x8x28xbf16, #tpu.memory_space<vmem>>, %arg2: memref<84x156xbf16, #tpu.memory_space<vmem>>, %arg3: memref<1x156xf32, #tpu.memory_space<vmem>>, %arg4: memref<156x78xbf16, #tpu.memory_space<vmem>>, %arg5: memref<234x176xbf16, #tpu.memory_space<vmem>>, %arg6: memref<1x176xf32, #tpu.memory_space<vmem>>, %arg7: memref<176x80xbf16, #tpu.memory_space<vmem>>, %arg8: memref<400x120xbf16, #tpu.memory_space<vmem>>, %arg9: memref<1x120xf32, #tpu.memory_space<vmem>>, %arg10: memref<120x84xbf16, #tpu.memory_space<vmem>>, %arg11: memref<1x84xf32, #tpu.memory_space<vmem>>, %arg12: memref<84x128xbf16, #tpu.memory_space<vmem>>, %arg13: memref<1x128xf32, #tpu.memory_space<vmem>>, %arg14: memref<8x128xf32, #tpu.memory_space<vmem>>) attributes {dimension_semantics = [#tpu.dimension_semantics<parallel>], iteration_bounds = array<i64: 1>, scalar_prefetch = 0 : i64, scratch_operands = 0 : i64, tpu.core_type = #tpu.core_type<tc>, window_params = [{transform_indices = @transform_0, window_bounds = array<i64: 1, 28, 8, 28>}, {pipeline_mode = #tpu.pipeline_mode<synchronous>, transform_indices = @transform_1, window_bounds = array<i64: 84, 156>}, {pipeline_mode = #tpu.pipeline_mode<synchronous>, transform_indices = @transform_2, window_bounds = array<i64: 1, 156>}, {pipeline_mode = #tpu.pipeline_mode<synchronous>, transform_indices = @transform_3, window_bounds = array<i64: 156, 78>}, {pipeline_mode = #tpu.pipeline_mode<synchronous>, transform_indices = @transform_4, window_bounds = array<i64: 234, 176>}, {pipeline_mode = #tpu.pipeline_mode<synchronous>, transform_indices = @transform_5, window_bounds = array<i64: 1, 176>}, {pipeline_mode = #tpu.pipeline_mode<synchronous>, transform_indices = @transform_6, window_bounds = array<i64: 176, 80>}, {pipeline_mode = #tpu.pipeline_mode<synchronous>, transform_indices = @transform_7, window_bounds = array<i64: 400, 120>}, {pipeline_mode = #tpu.pipeline_mode<synchronous>, transform_indices = @transform_8, window_bounds = array<i64: 1, 120>}, {pipeline_mode = #tpu.pipeline_mode<synchronous>, transform_indices = @transform_9, window_bounds = array<i64: 120, 84>}, {pipeline_mode = #tpu.pipeline_mode<synchronous>, transform_indices = @transform_10, window_bounds = array<i64: 1, 84>}, {pipeline_mode = #tpu.pipeline_mode<synchronous>, transform_indices = @transform_11, window_bounds = array<i64: 84, 128>}, {pipeline_mode = #tpu.pipeline_mode<synchronous>, transform_indices = @transform_12, window_bounds = array<i64: 1, 128>}, {transform_indices = @transform_13, window_bounds = array<i64: 8, 128>}]} {
    %c0 = arith.constant 0 : index
    %c0_0 = arith.constant 0 : index
    %c0_1 = arith.constant 0 : index
    %c0_2 = arith.constant 0 : index
    %0 = vector.load %arg1[%c0, %c0_0, %c0_1, %c0_2] : memref<1x28x8x28xbf16, #tpu.memory_space<vmem>>, vector<1x28x8x28xbf16>
    %1 = vector.shape_cast %0 : vector<1x28x8x28xbf16> to vector<28x8x28xbf16>
    %2 = arith.extf %1 : vector<28x8x28xbf16> to vector<28x8x28xf32>
    %3 = vector.extract_strided_slice %2 {offsets = [0, 0, 0], sizes = [26, 8, 28], strides = [1, 1, 1]} : vector<28x8x28xf32> to vector<26x8x28xf32>
    %4 = vector.shape_cast %3 : vector<26x8x28xf32> to vector<208x28xf32>
    %5 = vector.extract_strided_slice %2 {offsets = [1, 0, 0], sizes = [26, 8, 28], strides = [1, 1, 1]} : vector<28x8x28xf32> to vector<26x8x28xf32>
    %6 = vector.shape_cast %5 : vector<26x8x28xf32> to vector<208x28xf32>
    %7 = vector.extract_strided_slice %2 {offsets = [2, 0, 0], sizes = [26, 8, 28], strides = [1, 1, 1]} : vector<28x8x28xf32> to vector<26x8x28xf32>
    %8 = vector.shape_cast %7 : vector<26x8x28xf32> to vector<208x28xf32>
    %9 = tpu.concatenate %4, %6, %8 in 1 : vector<208x28xf32>, vector<208x28xf32>, vector<208x28xf32> -> vector<208x84xf32>
    %10 = arith.truncf %9 : vector<208x84xf32> to vector<208x84xbf16>
    %c0_3 = arith.constant 0 : index
    %c0_4 = arith.constant 0 : index
    %11 = vector.load %arg2[%c0_3, %c0_4] : memref<84x156xbf16, #tpu.memory_space<vmem>>, vector<84x156xbf16>
    %cst = arith.constant dense<0.000000e+00> : vector<208x156xf32>
    %12 = tpu.matmul %10, %11, %cst {dimension_numbers = #tpu.dot_dimension_numbers<[1], [0], [0], [1], [0, 0, 1, 1], [], []>} : vector<208x84xbf16>, vector<84x156xbf16>, vector<208x156xf32> -> vector<208x156xf32>
    %c0_5 = arith.constant 0 : index
    %c0_6 = arith.constant 0 : index
    %13 = vector.load %arg3[%c0_5, %c0_6] : memref<1x156xf32, #tpu.memory_space<vmem>>, vector<1x156xf32>
    %14 = vector.broadcast %13 : vector<1x156xf32> to vector<208x156xf32>
    %15 = arith.addf %12, %14 : vector<208x156xf32>
    %cst_7 = arith.constant 0.000000e+00 : f32
    %16 = vector.broadcast %cst_7 : f32 to vector<208x156xf32>
    %17 = arith.maximumf %15, %16 : vector<208x156xf32>
    %18 = vector.shape_cast %17 : vector<208x156xf32> to vector<13x16x156xf32>
    %19 = vector.extract_strided_slice %18 {offsets = [0, 0, 0], sizes = [13, 8, 156], strides = [1, 1, 1]} : vector<13x16x156xf32> to vector<13x8x156xf32>
    %20 = vector.extract_strided_slice %18 {offsets = [0, 8, 0], sizes = [13, 8, 156], strides = [1, 1, 1]} : vector<13x16x156xf32> to vector<13x8x156xf32>
    %21 = arith.maximumf %19, %20 : vector<13x8x156xf32>
    %22 = vector.shape_cast %21 : vector<13x8x156xf32> to vector<104x156xf32>
    %23 = vector.extract_strided_slice %22 {offsets = [0, 1], sizes = [104, 155], strides = [1, 1]} : vector<104x156xf32> to vector<104x155xf32>
    %24 = vector.extract_strided_slice %22 {offsets = [0, 0], sizes = [104, 1], strides = [1, 1]} : vector<104x156xf32> to vector<104x1xf32>
    %25 = tpu.concatenate %23, %24 in 1 : vector<104x155xf32>, vector<104x1xf32> -> vector<104x156xf32>
    %26 = arith.maximumf %22, %25 : vector<104x156xf32>
    %27 = arith.truncf %26 : vector<104x156xf32> to vector<104x156xbf16>
    %c0_8 = arith.constant 0 : index
    %c0_9 = arith.constant 0 : index
    %28 = vector.load %arg4[%c0_8, %c0_9] : memref<156x78xbf16, #tpu.memory_space<vmem>>, vector<156x78xbf16>
    %cst_10 = arith.constant dense<0.000000e+00> : vector<104x78xf32>
    %29 = tpu.matmul %27, %28, %cst_10 {dimension_numbers = #tpu.dot_dimension_numbers<[1], [0], [0], [1], [0, 0, 1, 1], [], []>} : vector<104x156xbf16>, vector<156x78xbf16>, vector<104x78xf32> -> vector<104x78xf32>
    %30 = vector.shape_cast %29 : vector<104x78xf32> to vector<13x8x78xf32>
    %31 = vector.extract_strided_slice %30 {offsets = [0, 0, 0], sizes = [11, 8, 78], strides = [1, 1, 1]} : vector<13x8x78xf32> to vector<11x8x78xf32>
    %32 = vector.shape_cast %31 : vector<11x8x78xf32> to vector<88x78xf32>
    %33 = vector.extract_strided_slice %30 {offsets = [1, 0, 0], sizes = [11, 8, 78], strides = [1, 1, 1]} : vector<13x8x78xf32> to vector<11x8x78xf32>
    %34 = vector.shape_cast %33 : vector<11x8x78xf32> to vector<88x78xf32>
    %35 = vector.extract_strided_slice %30 {offsets = [2, 0, 0], sizes = [11, 8, 78], strides = [1, 1, 1]} : vector<13x8x78xf32> to vector<11x8x78xf32>
    %36 = vector.shape_cast %35 : vector<11x8x78xf32> to vector<88x78xf32>
    %37 = tpu.concatenate %32, %34, %36 in 1 : vector<88x78xf32>, vector<88x78xf32>, vector<88x78xf32> -> vector<88x234xf32>
    %38 = arith.truncf %37 : vector<88x234xf32> to vector<88x234xbf16>
    %c0_11 = arith.constant 0 : index
    %c0_12 = arith.constant 0 : index
    %39 = vector.load %arg5[%c0_11, %c0_12] : memref<234x176xbf16, #tpu.memory_space<vmem>>, vector<234x176xbf16>
    %cst_13 = arith.constant dense<0.000000e+00> : vector<88x176xf32>
    %40 = tpu.matmul %38, %39, %cst_13 {dimension_numbers = #tpu.dot_dimension_numbers<[1], [0], [0], [1], [0, 0, 1, 1], [], []>} : vector<88x234xbf16>, vector<234x176xbf16>, vector<88x176xf32> -> vector<88x176xf32>
    %c0_14 = arith.constant 0 : index
    %c0_15 = arith.constant 0 : index
    %41 = vector.load %arg6[%c0_14, %c0_15] : memref<1x176xf32, #tpu.memory_space<vmem>>, vector<1x176xf32>
    %42 = vector.broadcast %41 : vector<1x176xf32> to vector<88x176xf32>
    %43 = arith.addf %40, %42 : vector<88x176xf32>
    %cst_16 = arith.constant 0.000000e+00 : f32
    %44 = vector.broadcast %cst_16 : f32 to vector<88x176xf32>
    %45 = arith.maximumf %43, %44 : vector<88x176xf32>
    %46 = vector.shape_cast %45 : vector<88x176xf32> to vector<11x8x176xf32>
    %47 = vector.extract_strided_slice %46 {offsets = [0, 0, 0], sizes = [10, 8, 176], strides = [1, 1, 1]} : vector<11x8x176xf32> to vector<10x8x176xf32>
    %48 = vector.shape_cast %47 : vector<10x8x176xf32> to vector<5x16x176xf32>
    %49 = vector.extract_strided_slice %48 {offsets = [0, 0, 0], sizes = [5, 8, 176], strides = [1, 1, 1]} : vector<5x16x176xf32> to vector<5x8x176xf32>
    %50 = vector.extract_strided_slice %48 {offsets = [0, 8, 0], sizes = [5, 8, 176], strides = [1, 1, 1]} : vector<5x16x176xf32> to vector<5x8x176xf32>
    %51 = arith.maximumf %49, %50 : vector<5x8x176xf32>
    %52 = vector.shape_cast %51 : vector<5x8x176xf32> to vector<40x176xf32>
    %53 = vector.extract_strided_slice %52 {offsets = [0, 1], sizes = [40, 175], strides = [1, 1]} : vector<40x176xf32> to vector<40x175xf32>
    %54 = vector.extract_strided_slice %52 {offsets = [0, 0], sizes = [40, 1], strides = [1, 1]} : vector<40x176xf32> to vector<40x1xf32>
    %55 = tpu.concatenate %53, %54 in 1 : vector<40x175xf32>, vector<40x1xf32> -> vector<40x176xf32>
    %56 = arith.maximumf %52, %55 : vector<40x176xf32>
    %57 = arith.truncf %56 : vector<40x176xf32> to vector<40x176xbf16>
    %c0_17 = arith.constant 0 : index
    %c0_18 = arith.constant 0 : index
    %58 = vector.load %arg7[%c0_17, %c0_18] : memref<176x80xbf16, #tpu.memory_space<vmem>>, vector<176x80xbf16>
    %cst_19 = arith.constant dense<0.000000e+00> : vector<40x80xf32>
    %59 = tpu.matmul %57, %58, %cst_19 {dimension_numbers = #tpu.dot_dimension_numbers<[1], [0], [0], [1], [0, 0, 1, 1], [], []>} : vector<40x176xbf16>, vector<176x80xbf16>, vector<40x80xf32> -> vector<40x80xf32>
    %60 = vector.shape_cast %59 : vector<40x80xf32> to vector<5x8x80xf32>
    %61 = vector.extract_strided_slice %60 {offsets = [0, 0, 0], sizes = [1, 8, 80], strides = [1, 1, 1]} : vector<5x8x80xf32> to vector<1x8x80xf32>
    %62 = vector.shape_cast %61 : vector<1x8x80xf32> to vector<8x80xf32>
    %63 = vector.extract_strided_slice %60 {offsets = [1, 0, 0], sizes = [1, 8, 80], strides = [1, 1, 1]} : vector<5x8x80xf32> to vector<1x8x80xf32>
    %64 = vector.shape_cast %63 : vector<1x8x80xf32> to vector<8x80xf32>
    %65 = vector.extract_strided_slice %60 {offsets = [2, 0, 0], sizes = [1, 8, 80], strides = [1, 1, 1]} : vector<5x8x80xf32> to vector<1x8x80xf32>
    %66 = vector.shape_cast %65 : vector<1x8x80xf32> to vector<8x80xf32>
    %67 = vector.extract_strided_slice %60 {offsets = [3, 0, 0], sizes = [1, 8, 80], strides = [1, 1, 1]} : vector<5x8x80xf32> to vector<1x8x80xf32>
    %68 = vector.shape_cast %67 : vector<1x8x80xf32> to vector<8x80xf32>
    %69 = vector.extract_strided_slice %60 {offsets = [4, 0, 0], sizes = [1, 8, 80], strides = [1, 1, 1]} : vector<5x8x80xf32> to vector<1x8x80xf32>
    %70 = vector.shape_cast %69 : vector<1x8x80xf32> to vector<8x80xf32>
    %71 = tpu.concatenate %62, %64, %66, %68, %70 in 1 : vector<8x80xf32>, vector<8x80xf32>, vector<8x80xf32>, vector<8x80xf32>, vector<8x80xf32> -> vector<8x400xf32>
    %72 = arith.truncf %71 : vector<8x400xf32> to vector<8x400xbf16>
    %c0_20 = arith.constant 0 : index
    %c0_21 = arith.constant 0 : index
    %73 = vector.load %arg8[%c0_20, %c0_21] : memref<400x120xbf16, #tpu.memory_space<vmem>>, vector<400x120xbf16>
    %cst_22 = arith.constant dense<0.000000e+00> : vector<8x120xf32>
    %74 = tpu.matmul %72, %73, %cst_22 {dimension_numbers = #tpu.dot_dimension_numbers<[1], [0], [0], [1], [0, 0, 1, 1], [], []>} : vector<8x400xbf16>, vector<400x120xbf16>, vector<8x120xf32> -> vector<8x120xf32>
    %c0_23 = arith.constant 0 : index
    %c0_24 = arith.constant 0 : index
    %75 = vector.load %arg9[%c0_23, %c0_24] : memref<1x120xf32, #tpu.memory_space<vmem>>, vector<1x120xf32>
    %76 = vector.broadcast %75 : vector<1x120xf32> to vector<8x120xf32>
    %77 = arith.addf %74, %76 : vector<8x120xf32>
    %cst_25 = arith.constant 0.000000e+00 : f32
    %78 = vector.broadcast %cst_25 : f32 to vector<8x120xf32>
    %79 = arith.maximumf %77, %78 : vector<8x120xf32>
    %80 = arith.truncf %79 : vector<8x120xf32> to vector<8x120xbf16>
    %c0_26 = arith.constant 0 : index
    %c0_27 = arith.constant 0 : index
    %81 = vector.load %arg10[%c0_26, %c0_27] : memref<120x84xbf16, #tpu.memory_space<vmem>>, vector<120x84xbf16>
    %cst_28 = arith.constant dense<0.000000e+00> : vector<8x84xf32>
    %82 = tpu.matmul %80, %81, %cst_28 {dimension_numbers = #tpu.dot_dimension_numbers<[1], [0], [0], [1], [0, 0, 1, 1], [], []>} : vector<8x120xbf16>, vector<120x84xbf16>, vector<8x84xf32> -> vector<8x84xf32>
    %c0_29 = arith.constant 0 : index
    %c0_30 = arith.constant 0 : index
    %83 = vector.load %arg11[%c0_29, %c0_30] : memref<1x84xf32, #tpu.memory_space<vmem>>, vector<1x84xf32>
    %84 = vector.broadcast %83 : vector<1x84xf32> to vector<8x84xf32>
    %85 = arith.addf %82, %84 : vector<8x84xf32>
    %cst_31 = arith.constant 0.000000e+00 : f32
    %86 = vector.broadcast %cst_31 : f32 to vector<8x84xf32>
    %87 = arith.maximumf %85, %86 : vector<8x84xf32>
    %88 = arith.truncf %87 : vector<8x84xf32> to vector<8x84xbf16>
    %c0_32 = arith.constant 0 : index
    %c0_33 = arith.constant 0 : index
    %89 = vector.load %arg12[%c0_32, %c0_33] : memref<84x128xbf16, #tpu.memory_space<vmem>>, vector<84x128xbf16>
    %cst_34 = arith.constant dense<0.000000e+00> : vector<8x128xf32>
    %90 = tpu.matmul %88, %89, %cst_34 {dimension_numbers = #tpu.dot_dimension_numbers<[1], [0], [0], [1], [0, 0, 1, 1], [], []>} : vector<8x84xbf16>, vector<84x128xbf16>, vector<8x128xf32> -> vector<8x128xf32>
    %c0_35 = arith.constant 0 : index
    %c0_36 = arith.constant 0 : index
    %91 = vector.load %arg13[%c0_35, %c0_36] : memref<1x128xf32, #tpu.memory_space<vmem>>, vector<1x128xf32>
    %92 = vector.broadcast %91 : vector<1x128xf32> to vector<8x128xf32>
    %93 = arith.addf %90, %92 : vector<8x128xf32>
    %cst_37 = arith.constant dense<0xFF800000> : vector<8xf32>
    %94 = vector.multi_reduction <maximumf>, %93, %cst_37 [1] : vector<8x128xf32> to vector<8xf32>
    %95 = vector.shape_cast %94 : vector<8xf32> to vector<8x1xf32>
    %96 = vector.broadcast %95 : vector<8x1xf32> to vector<8x128xf32>
    %97 = arith.subf %93, %96 : vector<8x128xf32>
    %98 = math.exp %97 : vector<8x128xf32>
    %cst_38 = arith.constant dense<0.000000e+00> : vector<8xf32>
    %99 = vector.multi_reduction <add>, %98, %cst_38 [1] : vector<8x128xf32> to vector<8xf32>
    %100 = vector.shape_cast %99 : vector<8xf32> to vector<8x1xf32>
    %101 = math.log %100 : vector<8x1xf32>
    %102 = vector.broadcast %101 : vector<8x1xf32> to vector<8x128xf32>
    %103 = arith.subf %97, %102 : vector<8x128xf32>
    %c0_39 = arith.constant 0 : index
    %c0_40 = arith.constant 0 : index
    %104 = vector.load %arg14[%c0_39, %c0_40] : memref<8x128xf32, #tpu.memory_space<vmem>>, vector<8x128xf32>
    tpu.vector_store %arg14[%c0_39, %c0_40], %103 {strides = array<i32>} : memref<8x128xf32, #tpu.memory_space<vmem>>, vector<8x128xf32>,
    return
  }
  func.func @transform_0(%arg0: i32) -> (i32, i32, i32, i32) {
    %c0_i32 = arith.constant 0 : i32
    %c0_i32_0 = arith.constant 0 : i32
    %c0_i32_1 = arith.constant 0 : i32
    %c0_i32_2 = arith.constant 0 : i32
    return %arg0, %c0_i32, %c0_i32_0, %c0_i32_1 : i32, i32, i32, i32
  }
  func.func @transform_1(%arg0: i32) -> (i32, i32) {
    %c0_i32 = arith.constant 0 : i32
    %c0_i32_0 = arith.constant 0 : i32
    %c0_i32_1 = arith.constant 0 : i32
    return %c0_i32, %c0_i32_0 : i32, i32
  }
  func.func @transform_2(%arg0: i32) -> (i32, i32) {
    %c0_i32 = arith.constant 0 : i32
    %c0_i32_0 = arith.constant 0 : i32
    %c0_i32_1 = arith.constant 0 : i32
    return %c0_i32, %c0_i32_0 : i32, i32
  }
  func.func @transform_3(%arg0: i32) -> (i32, i32) {
    %c0_i32 = arith.constant 0 : i32
    %c0_i32_0 = arith.constant 0 : i32
    %c0_i32_1 = arith.constant 0 : i32
    return %c0_i32, %c0_i32_0 : i32, i32
  }
  func.func @transform_4(%arg0: i32) -> (i32, i32) {
    %c0_i32 = arith.constant 0 : i32
    %c0_i32_0 = arith.constant 0 : i32
    %c0_i32_1 = arith.constant 0 : i32
    return %c0_i32, %c0_i32_0 : i32, i32
  }
  func.func @transform_5(%arg0: i32) -> (i32, i32) {
    %c0_i32 = arith.constant 0 : i32
    %c0_i32_0 = arith.constant 0 : i32
    %c0_i32_1 = arith.constant 0 : i32
    return %c0_i32, %c0_i32_0 : i32, i32
  }
  func.func @transform_6(%arg0: i32) -> (i32, i32) {
    %c0_i32 = arith.constant 0 : i32
    %c0_i32_0 = arith.constant 0 : i32
    %c0_i32_1 = arith.constant 0 : i32
    return %c0_i32, %c0_i32_0 : i32, i32
  }
  func.func @transform_7(%arg0: i32) -> (i32, i32) {
    %c0_i32 = arith.constant 0 : i32
    %c0_i32_0 = arith.constant 0 : i32
    %c0_i32_1 = arith.constant 0 : i32
    return %c0_i32, %c0_i32_0 : i32, i32
  }
  func.func @transform_8(%arg0: i32) -> (i32, i32) {
    %c0_i32 = arith.constant 0 : i32
    %c0_i32_0 = arith.constant 0 : i32
    %c0_i32_1 = arith.constant 0 : i32
    return %c0_i32, %c0_i32_0 : i32, i32
  }
  func.func @transform_9(%arg0: i32) -> (i32, i32) {
    %c0_i32 = arith.constant 0 : i32
    %c0_i32_0 = arith.constant 0 : i32
    %c0_i32_1 = arith.constant 0 : i32
    return %c0_i32, %c0_i32_0 : i32, i32
  }
  func.func @transform_10(%arg0: i32) -> (i32, i32) {
    %c0_i32 = arith.constant 0 : i32
    %c0_i32_0 = arith.constant 0 : i32
    %c0_i32_1 = arith.constant 0 : i32
    return %c0_i32, %c0_i32_0 : i32, i32
  }
  func.func @transform_11(%arg0: i32) -> (i32, i32) {
    %c0_i32 = arith.constant 0 : i32
    %c0_i32_0 = arith.constant 0 : i32
    %c0_i32_1 = arith.constant 0 : i32
    return %c0_i32, %c0_i32_0 : i32, i32
  }
  func.func @transform_12(%arg0: i32) -> (i32, i32) {
    %c0_i32 = arith.constant 0 : i32
    %c0_i32_0 = arith.constant 0 : i32
    %c0_i32_1 = arith.constant 0 : i32
    return %c0_i32, %c0_i32_0 : i32, i32
  }
  func.func @transform_13(%arg0: i32) -> (i32, i32) {
    %c0_i32 = arith.constant 0 : i32
    %c0_i32_0 = arith.constant 0 : i32
    return %arg0, %c0_i32 : i32, i32
  }
}

</mosaic_0001>

<bundles_post_ra>
// kernel: net_forward.1
= control target key start
LH: loop header
LB: loop body
LE: loop exit
PB: predicated region body
PF: predicated region fallthrough
CT: control target
= control target key end

     0   :  { %v3085_v3 = vmov 0   ;;  %s3086_s16 = smov 28   ;;  %s3087_s27 = smov 56   ;;  %vm469_vm0 = vcmask 1041408   ;;  %vm284_vm1 = vcmask 228352   ;;  %vm311_vm2 = vcmask 457728   ;;  %s4214_s0 = inlined_call_operand.vmem [shape: bf16[1,28,8,28], index: 0, kind: input, shape index: {}]   ;;  %s4215_s1 = inlined_call_operand.vmem [shape: bf16[84,156], index: 1, kind: input, shape index: {}]   ;;  %s4216_s3 = inlined_call_operand.vmem [shape: bf16[156,78], index: 3, kind: input, shape index: {}]   ;;  %s4217_s2 = inlined_call_operand.vmem [shape: f32[1,156], index: 2, kind: input, shape index: {}]   ;;  %s4218_s4 = inlined_call_operand.vmem [shape: bf16[234,176], index: 4, kind: input, shape index: {}]   ;;  %s4219_s6 = inlined_call_operand.vmem [shape: bf16[176,80], index: 6, kind: input, shape index: {}]   ;;  %s4220_s5 = inlined_call_operand.vmem [shape: f32[1,176], index: 5, kind: input, shape index: {}]   ;;  %s4221_s7 = inlined_call_operand.vmem [shape: bf16[400,120], index: 7, kind: input, shape index: {}]   ;;  %s4222_s9 = inlined_call_operand.vmem [shape: bf16[120,84], index: 9, kind: input, shape index: {}]   ;;  %s4223_s11 = inlined_call_operand.vmem [shape: bf16[84,128], index: 11, kind: input, shape index: {}]   ;;  %s4224_s8 = inlined_call_operand.vmem [shape: f32[1,120], index: 8, kind: input, shape index: {}]   ;;  %s4225_s10 = inlined_call_operand.vmem [shape: f32[1,84], index: 10, kind: input, shape index: {}]   ;;  %s4226_s12 = inlined_call_operand.vmem [shape: f32[1,128], index: 12, kind: input, shape index: {}]   ;;  %s4227_s13 = inlined_call_operand.vmem [shape: f32[8,128], index: 13, kind: output, shape index: {}]  }
   0x1   :  { %v3171_v0 = vld [vmem:[%s4214_s0] sm:$0xff]   ;;  %v2549_v1 = vld [vmem:[%s4214_s0 + $0x8] sm:$0xff]   ;;  %v2550_v2 = vld [vmem:[%s4214_s0 + $0x10] sm:$0xff]   ;;  %508 = vmatprep.mubr.bf16.mxu0 %v3085_v3  ;;  %1032 = vmatprep.subr.bf16.mxu1 %v3085_v3  ;;  %vm429_vm3 = vcmask 687104   ;;  %vm1028_vm4 = vcmask 1045504   ;;  %s3089_s30 = smov 127  }
   0x2   :  { %v2496_v4 = vunpack.c.h.bf16 %v3171_v0  ;;  %v3182_v5 = vunpack.c.l.bf16 %v2549_v1  ;;  %v3184_v6 = vunpack.c.h.bf16 %v2549_v1  ;;  %v3186_v7 = vunpack.c.l.bf16 %v2550_v2  ;;  %v2551_v9 = vld [vmem:[%s4214_s0 + $0x18] sm:$0xff]   ;;  %v2959_v14 = vld [vmem:[%s4215_s1 + $0x4] ss:$8 sps:$4 sm:$0xff]   ;;  %v2961_v15 = vld [vmem:[%s4215_s1] ss:$8 sps:$4 sm:$0xff]   ;;  %s3090_s18 = smov 78  }
   0x3   :  { %v3188_v8 = vunpack.c.h.bf16 %v2550_v2  ;;  %v3201_v13 = vunpack.c.l.bf16 %v2551_v9  ;;  %v3212_v17 = vunpack.c.h.bf16 %v2551_v9  ;;  %v2552_v18 = vld [vmem:[%s4214_s0 + $0x20] sm:$0xff]   ;;  %v2962_v19 = vld [vmem:[%s4215_s1 + $0x14] ss:$8 sps:$4 sm:$0xff]   ;;  %476 = vmatprep.subr.bf16.mxu0 %v2959_v14  ;;  %v2964_v20 = vld [vmem:[%s4215_s1 + $0x10] ss:$8 sps:$4 sm:$0xff]   ;;  %vm874_vm5 = vcmask 220160  }
   0x4   :  { %v2649_v10 = vpack.i.bf16 %v3182_v5, %v2496_v4  ;;  %v2659_v11 = vpack.i.bf16 %v3186_v7, %v3184_v6  ;;  %v2654_v12 = vpack.i.bf16 %v3184_v6, %v3182_v5  ;;  %477 = vmatpush1.bf16.msra.mxu0 %v2961_v15  ;;  %v3226_v22 = vunpack.c.l.bf16 %v2552_v18  ;;  %v2965_v23 = vld [vmem:[%s4215_s1 + $0x24] ss:$8 sps:$4 sm:$0xff]   ;;  %v2967_v27 = vld [vmem:[%s4215_s1 + $0x20] ss:$8 sps:$4 sm:$0xff]   ;;  %v2968_v30 = vld [vmem:[%s4215_s1 + $0x34] ss:$8 sps:$4 sm:$0xff]  }
   0x5   :  { %v2664_v16 = vpack.i.bf16 %v3188_v8, %v3186_v7  ;;  %v2669_v21 = vpack.i.bf16 %v3201_v13, %v3188_v8  ;;  %478 = vmatprep.subr.bf16.mxu0 %v2962_v19  ;;  %v2674_v24 = vpack.i.bf16 %v3212_v17, %v3201_v13  ;;  %v3234_v25 = vunpack.c.h.bf16 %v2552_v18  ;;  %v2553_v26 = vld [vmem:[%s4214_s0 + $0x28] sm:$0xff]   ;;  %v2554_v33 = vld [vmem:[%s4214_s0 + $0x30] sm:$0xff]   ;;  %v2555_v40 = vld [vmem:[%s4214_s0 + $0x38] sm:$0xff]   ;;  %s3091_s21 = smov 47   ;;  %s3092_s25 = smov 80  }
   0x6   :  { %2650 = vrot.lane.b32.xlu0 %v2649_v10, %s3086_s16  ;;  %2660 = vrot.lane.b32.xlu1 %v2659_v11, %s3086_s16  ;;  %v2679_v28 = vpack.i.bf16 %v3226_v22, %v3212_v17  ;;  %v3245_v29 = vunpack.c.l.bf16 %v2553_v26  ;;  %v3253_v32 = vunpack.c.h.bf16 %v2553_v26  ;;  %v2970_v34 = vld [vmem:[%s4215_s1 + $0x30] ss:$8 sps:$4 sm:$0xff]   ;;  %v3264_v36 = vunpack.c.l.bf16 %v2554_v33  ;;  %v2971_v37 = vld [vmem:[%s4215_s1 + $0x44] ss:$8 sps:$4 sm:$0xff]   ;;  %s3094_s22 = smov 112   ;;  %s3096_s23 = smov 64  }
   0x7   :  { %v2684_v31 = vpack.i.bf16 %v3234_v25, %v3226_v22  ;;  %v3272_v39 = vunpack.c.h.bf16 %v2554_v33  ;;  %v361_v41 = vld [vmem:[%s4215_s1 + $0x50] sm:$0x33]  ;;  %v2973_v42 = vld [vmem:[%s4215_s1 + $0x40] ss:$8 sps:$4 sm:$0xff]   ;;  %v3286_v44 = vunpack.c.l.bf16 %v2555_v40  ;;  %v3291_v48 = vunpack.c.h.bf16 %v2555_v40  ;;  %v2559_v2 = vld [vmem:[%s4214_s0 + $0x58] sm:$0xff]  }
   0x8   :  { %479 = vmatpush1.bf16.msra.mxu0 %v2964_v20  ;;  %v2689_v35 = vpack.i.bf16 %v3245_v29, %v3234_v25  ;;  %v2694_v38 = vpack.i.bf16 %v3253_v32, %v3245_v29  ;;  %v2699_v43 = vpack.i.bf16 %v3264_v36, %v3253_v32  ;;  %v2365_v45 = vcombine.high %v361_v41, %v361_v41  ;;  %v2556_v49 = vld [vmem:[%s4214_s0 + $0x40] sm:$0xff]   ;;  %v2557_v55 = vld [vmem:[%s4214_s0 + $0x48] sm:$0xff]   ;;  %v2558_v60 = vld [vmem:[%s4214_s0 + $0x50] sm:$0xff]  }
   0x9   :  { %480 = vmatprep.subr.bf16.mxu0 %v2965_v23  ;;  %v2364_v46 = vcombine.low %v361_v41, %v361_v41  ;;  %v2704_v47 = vpack.i.bf16 %v3272_v39, %v3264_v36  ;;  %v2709_v50 = vpack.i.bf16 %v3286_v44, %v3272_v39  ;;  %v3299_v51 = vunpack.c.l.bf16 %v2556_v49  ;;  %v2560_v14 = vld [vmem:[%s4214_s0 + $0x60] sm:$0xff]   ;;  %v2561_v23 = vld [vmem:[%s4214_s0 + $0x68] sm:$0xff]  }
   0xa   :  { %2655 = vrot.lane.b32.xlu0 %v2654_v12, %s3087_s27  ;;  %2665 = vrot.lane.b32.xlu1 %v2664_v16, %s3087_s27  ;;  %v2714_v53 = vpack.i.bf16 %v3291_v48, %v3286_v44  ;;  %v3306_v54 = vunpack.c.h.bf16 %v2556_v49  ;;  %v3314_v57 = vunpack.c.l.bf16 %v2557_v55  ;;  %v3320_v59 = vunpack.c.h.bf16 %v2557_v55 }
   0xb   :  { %v471_v52 = vsel %vm469_vm0, %v2364_v46, 0  ;;  %v2719_v56 = vpack.i.bf16 %v3299_v51, %v3291_v48  ;;  %v3328_v62 = vunpack.c.l.bf16 %v2558_v60  ;;  %v3333_v1 = vunpack.c.h.bf16 %v2558_v60 }
   0xc   :  { %481 = vmatpush1.bf16.msra.mxu0 %v2967_v27  ;;  %v2724_v58 = vpack.i.bf16 %v3306_v54, %v3299_v51  ;;  %v2729_v61 = vpack.i.bf16 %v3314_v57, %v3306_v54  ;;  %v2734_v63 = vpack.i.bf16 %v3320_v59, %v3314_v57  ;;  %v3341_v10 = vunpack.c.l.bf16 %v2559_v2 }
   0xd   :  { %482 = vmatprep.subr.bf16.mxu0 %v2968_v30  ;;  %v2739_v9 = vpack.i.bf16 %v3328_v62, %v3320_v59  ;;  %v2744_v11 = vpack.i.bf16 %v3333_v1, %v3328_v62  ;;  %v3346_v12 = vunpack.c.h.bf16 %v2559_v2  ;;  %v3354_v16 = vunpack.c.l.bf16 %v2560_v14 }
   0xe   :  { %2670 = vrot.lane.b32.xlu0 %v2669_v21, %s3086_s16  ;;  %2675 = vrot.lane.b32.xlu1 %v2674_v24, %s3087_s27  ;;  %v2749_v15 = vpack.i.bf16 %v3341_v10, %v3333_v1  ;;  %v3359_v19 = vunpack.c.h.bf16 %v2560_v14  ;;  %v2547_v24 = vunpack.c.l.bf16 %v2561_v23  ;;  %v2548_v26 = vunpack.c.h.bf16 %v2561_v23 }
   0xf   :  { %v2754_v18 = vpack.i.bf16 %v3346_v12, %v3341_v10  ;;  %v2759_v20 = vpack.i.bf16 %v3354_v16, %v3346_v12  ;;  %v2495_v33 = vunpack.c.l.bf16 %v3171_v0  ;;  %vm795_vm6 = vcmask 1039360  }
  0x10   :  { %483 = vmatpush1.bf16.msra.mxu0 %v2970_v34  ;;  %v2764_v21 = vpack.i.bf16 %v3359_v19, %v3354_v16  ;;  %v2769_v27 = vpack.i.bf16 %v2547_v24, %v3359_v19  ;;  %vm1442_vm7 = vcmask 1044480   ;;  %vm1198_vm8 = vcmask 637952  }
  0x11   :  { %484 = vmatprep.subr.bf16.mxu0 %v2971_v37  ;;  %vm1423_vm9 = vcmask 867328   ;;  %vm1628_vm10 = vcmask 384000   ;;  %vm1738_vm11 = vcmask 392192   ;;  %vm1822_vm12 = vcmask 261120  }
  0x12   :  { %2680 = vrot.lane.b32.xlu0 %v2679_v28, %s3086_s16  ;;  %2685 = vrot.lane.b32.xlu1 %v2684_v31, %s3087_s27  ;;  %v2774_v28 = vpack.i.bf16 %v2548_v26, %v2547_v24  ;;  %vm1820_vm13 = vcmask 654336   ;;  %vm1824_vm14 = vcmask 916480   ;;  %vm1826_vm15 = vcmask 523264  }
  0x14   :  { %485 = vmatpush1.bf16.msra.mxu0 %v2973_v42 }
  0x15   :  { %2366 = vmatprep.subr.msk.bf16.mxu0 %vm469_vm0, %v2365_v45 }
  0x16   :  { %2690 = vrot.lane.b32.xlu0 %v2689_v35, %s3086_s16  ;;  %2695 = vrot.lane.b32.xlu1 %v2694_v38, %s3087_s27 }
  0x18   :  { %487 = vmatpush1.bf16.msra.mxu0 %v471_v52 }
  0x19   :  { %1748 = vmatprep.subr.bf16.mxu0 %v3085_v3 }
  0x1a   :  { %2700 = vrot.lane.b32.xlu0 %v2699_v43, %s3086_s16  ;;  %2705 = vrot.lane.b32.xlu1 %v2704_v47, %s3087_s27 }
  0x1e   :  { %2710 = vrot.lane.b32.xlu0 %v2709_v50, %s3086_s16  ;;  %2715 = vrot.lane.b32.xlu1 %v2714_v53, %s3087_s27 }
  0x22   :  { %2720 = vrot.lane.b32.xlu0 %v2719_v56, %s3086_s16  ;;  %2725 = vrot.lane.b32.xlu1 %v2724_v58, %s3087_s27 }
  0x26   :  { %2730 = vrot.lane.b32.xlu0 %v2729_v61, %s3086_s16  ;;  %2735 = vrot.lane.b32.xlu1 %v2734_v63, %s3087_s27 }
  0x2a   :  { %2740 = vrot.lane.b32.xlu0 %v2739_v9, %s3086_s16  ;;  %2745 = vrot.lane.b32.xlu1 %v2744_v11, %s3087_s27 }
  0x2e   :  { %2750 = vrot.lane.b32.xlu0 %v2749_v15, %s3086_s16  ;;  %2755 = vrot.lane.b32.xlu1 %v2754_v18, %s3087_s27 }
  0x32   :  { %2760 = vrot.lane.b32.xlu0 %v2759_v20, %s3086_s16  ;;  %2765 = vrot.lane.b32.xlu1 %v2764_v21, %s3087_s27 }
  0x36   :  { %2770 = vrot.lane.b32.xlu0 %v2769_v27, %s3086_s16  ;;  %2775 = vrot.lane.b32.xlu1 %v2774_v28, %s3087_s27 }
  0x78   :  { %v2651_v30 = vpop.permute.xlu0 %2650  ;;  %v2661_v31 = vpop.permute.xlu1 %2660 }
  0x79   :  { %v2653_v34 = vunpack.i.h.bf16 %v2651_v30  ;;  %v2652_v35 = vunpack.i.l.bf16 %v2651_v30  ;;  %v2663_v43 = vunpack.i.h.bf16 %v2661_v31  ;;  %v2662_v45 = vunpack.i.l.bf16 %v2661_v31 }
  0x7b   :  { %v286_v41 = vsel %vm284_vm1, %v2496_v4, %v2653_v34  ;;  %v285_v42 = vsel %vm284_vm1, %v2495_v33, %v2652_v35  ;;  %v288_v56 = vsel %vm284_vm1, %v3184_v6, %v2663_v43  ;;  %v287_v0 = vsel %vm284_vm1, %v3182_v5, %v2662_v45 }
  0x7c   :  { %v2656_v37 = vpop.permute.xlu0 %2655  ;;  %v2666_v46 = vpop.permute.xlu1 %2665 }
  0x7d   :  { %v2658_v38 = vunpack.i.h.bf16 %v2656_v37  ;;  %v2657_v40 = vunpack.i.l.bf16 %v2656_v37  ;;  %v2668_v52 = vunpack.i.h.bf16 %v2666_v46  ;;  %v2667_v53 = vunpack.i.l.bf16 %v2666_v46 }
  0x7f   :  { %v312_v47 = vsel %vm311_vm2, %v285_v42, %v2657_v40  ;;  %v313_v49 = vsel %vm311_vm2, %v286_v41, %v2658_v38  ;;  %v314_v61 = vsel %vm311_vm2, %v287_v0, %v2667_v53  ;;  %v315_v63 = vsel %vm311_vm2, %v288_v56, %v2668_v52 }
  0x80   :  { %v338_v50 = vpack.c.bf16 %v313_v49, %v312_v47  ;;  %v2671_v55 = vpop.permute.xlu0 %2670  ;;  %v2676_v60 = vpop.permute.xlu1 %2675  ;;  %v339_v11 = vpack.c.bf16 %v315_v63, %v314_v61 }
  0x81   :  { %v2673_v4 = vunpack.i.h.bf16 %v2671_v55  ;;  %v2672_v58 = vunpack.i.l.bf16 %v2671_v55  ;;  %v2678_v2 = vunpack.i.h.bf16 %v2676_v60  ;;  %v2677_v9 = vunpack.i.l.bf16 %v2676_v60 }
  0x82   :  { %2367 = vmatmul.mubr.msk.bf16.vlgmr.msra.gmra.mrb[0].mxu0 %vm429_vm3, %v338_v50 }
  0x83   :  { %518 = vmatprep.mubr.bf16.mxu0 %v3085_v3  ;;  %v290_v6 = vsel %vm284_vm1, %v3188_v8, %v2673_v4  ;;  %v289_v5 = vsel %vm284_vm1, %v3186_v7, %v2672_v58 }
  0x84   :  { %v2681_v14 = vpop.permute.xlu0 %2680  ;;  %v316_v15 = vsel %vm311_vm2, %v289_v5, %v2677_v9  ;;  %v317_v18 = vsel %vm311_vm2, %v290_v6, %v2678_v2  ;;  %v2686_v23 = vpop.permute.xlu1 %2685 }
  0x85   :  { %v2683_v20 = vunpack.i.h.bf16 %v2681_v14  ;;  %v2682_v21 = vunpack.i.l.bf16 %v2681_v14  ;;  %v340_v24 = vpack.c.bf16 %v317_v18, %v316_v15  ;;  %v2688_v26 = vunpack.i.h.bf16 %v2686_v23 }
  0x86   :  { %v2687_v27 = vunpack.i.l.bf16 %v2686_v23 }
  0x87   :  { %v292_v8 = vsel %vm284_vm1, %v3212_v17, %v2683_v20  ;;  %v291_v7 = vsel %vm284_vm1, %v3201_v13, %v2682_v21 }
  0x88   :  { %v2691_v28 = vpop.permute.xlu0 %2690  ;;  %v318_v30 = vsel %vm311_vm2, %v291_v7, %v2687_v27  ;;  %v319_v31 = vsel %vm311_vm2, %v292_v8, %v2688_v26  ;;  %v2696_v35 = vpop.permute.xlu1 %2695 }
  0x89   :  { %v2693_v33 = vunpack.i.h.bf16 %v2691_v28  ;;  %v2692_v34 = vunpack.i.l.bf16 %v2691_v28  ;;  %v341_v37 = vpack.c.bf16 %v319_v31, %v318_v30  ;;  %v2698_v38 = vunpack.i.h.bf16 %v2696_v35 }
  0x8a   :  { %2368 = vmatmul.mubr.msk.bf16.gmra.mrb[4].mxu0 %vm429_vm3, %v339_v11  ;;  %v2697_v40 = vunpack.i.l.bf16 %v2696_v35 }
  0x8b   :  { %528 = vmatprep.mubr.bf16.mxu0 %v3085_v3  ;;  %v294_v17 = vsel %vm284_vm1, %v3234_v25, %v2693_v33  ;;  %v293_v13 = vsel %vm284_vm1, %v3226_v22, %v2692_v34 }
  0x8c   :  { %v2701_v41 = vpop.permute.xlu0 %2700  ;;  %v320_v42 = vsel %vm311_vm2, %v293_v13, %v2697_v40  ;;  %v321_v43 = vsel %vm311_vm2, %v294_v17, %v2698_v38  ;;  %v2706_v47 = vpop.permute.xlu1 %2705 }
  0x8d   :  { %v2703_v45 = vunpack.i.h.bf16 %v2701_v41  ;;  %v2702_v46 = vunpack.i.l.bf16 %v2701_v41  ;;  %v342_v49 = vpack.c.bf16 %v321_v43, %v320_v42  ;;  %v2708_v50 = vunpack.i.h.bf16 %v2706_v47 }
  0x8e   :  { %v2707_v52 = vunpack.i.l.bf16 %v2706_v47 }
  0x8f   :  { %v296_v25 = vsel %vm284_vm1, %v3253_v32, %v2703_v45  ;;  %v295_v22 = vsel %vm284_vm1, %v3245_v29, %v2702_v46 }
  0x90   :  { %v2711_v53 = vpop.permute.xlu0 %2710  ;;  %v322_v55 = vsel %vm311_vm2, %v295_v22, %v2707_v52  ;;  %v323_v56 = vsel %vm311_vm2, %v296_v25, %v2708_v50  ;;  %v2716_v58 = vpop.permute.xlu1 %2715 }
  0x91   :  { %v2713_v0 = vunpack.i.h.bf16 %v2711_v53  ;;  %v2712_v4 = vunpack.i.l.bf16 %v2711_v53  ;;  %v343_v60 = vpack.c.bf16 %v323_v56, %v322_v55  ;;  %v2718_v61 = vunpack.i.h.bf16 %v2716_v58 }
  0x92   :  { %2369 = vmatmul.mubr.msk.bf16.gmra.mrb[8].mxu0 %vm429_vm3, %v340_v24  ;;  %v2717_v63 = vunpack.i.l.bf16 %v2716_v58 }
  0x93   :  { %538 = vmatprep.mubr.bf16.mxu0 %v3085_v3  ;;  %v298_v32 = vsel %vm284_vm1, %v3272_v39, %v2713_v0  ;;  %v297_v29 = vsel %vm284_vm1, %v3264_v36, %v2712_v4 }
  0x94   :  { %v2721_v2 = vpop.permute.xlu0 %2720  ;;  %v324_v9 = vsel %vm311_vm2, %v297_v29, %v2717_v63  ;;  %v325_v11 = vsel %vm311_vm2, %v298_v32, %v2718_v61  ;;  %v2726_v14 = vpop.permute.xlu1 %2725 }
  0x95   :  { %v2723_v6 = vunpack.i.h.bf16 %v2721_v2  ;;  %v2722_v5 = vunpack.i.l.bf16 %v2721_v2  ;;  %v344_v15 = vpack.c.bf16 %v325_v11, %v324_v9  ;;  %v2728_v18 = vunpack.i.h.bf16 %v2726_v14 }
  0x96   :  { %v2727_v20 = vunpack.i.l.bf16 %v2726_v14 }
  0x97   :  { %v300_v39 = vsel %vm284_vm1, %v3291_v48, %v2723_v6  ;;  %v299_v36 = vsel %vm284_vm1, %v3286_v44, %v2722_v5 }
  0x98   :  { %v2731_v21 = vpop.permute.xlu0 %2730  ;;  %v326_v23 = vsel %vm311_vm2, %v299_v36, %v2727_v20  ;;  %v327_v24 = vsel %vm311_vm2, %v300_v39, %v2728_v18  ;;  %v2736_v8 = vpop.permute.xlu1 %2735  ;;  %v2976_v20 = vld [vmem:[%s4216_s3] sm:$0xff]   ;;  %v2977_v39 = vld [vmem:[%s4216_s3 + $0x8] sm:$0xff]   ;;  %v2979_v36 = vld [vmem:[%s4216_s3 + $0x18] sm:$0xff]  }
  0x99   :  { %v2733_v26 = vunpack.i.h.bf16 %v2731_v21  ;;  %v2732_v27 = vunpack.i.l.bf16 %v2731_v21  ;;  %v345_v7 = vpack.c.bf16 %v327_v24, %v326_v23  ;;  %v2738_v28 = vunpack.i.h.bf16 %v2736_v8  ;;  %1033 = vmatpush1.bf16.msra.mxu1 %v2976_v20  ;;  %v2980_v23 = vld [vmem:[%s4216_s3 + $0x20] sm:$0xff]  }
  0x9a   :  { %2370 = vmatmul.mubr.msk.bf16.gmra.mrb[12].mxu0 %vm429_vm3, %v341_v37  ;;  %v2737_v30 = vunpack.i.l.bf16 %v2736_v8  ;;  %1034 = vmatprep.subr.bf16.mxu1 %v3085_v3  ;;  %v2981_v8 = vld [vmem:[%s4216_s3 + $0x28] sm:$0xff]  }
  0x9b   :  { %548 = vmatprep.mubr.bf16.mxu0 %v3085_v3  ;;  %v302_v48 = vsel %vm284_vm1, %v3306_v54, %v2733_v26  ;;  %v301_v44 = vsel %vm284_vm1, %v3299_v51, %v2732_v27  ;;  %v362_v26 = vld [vmem:[%s4217_s2] sm:$0x3] }
  0x9c   :  { %v2741_v31 = vpop.permute.xlu0 %2740  ;;  %v328_v33 = vsel %vm311_vm2, %v301_v44, %v2737_v30  ;;  %v329_v34 = vsel %vm311_vm2, %v302_v48, %v2738_v28  ;;  %v2746_v38 = vpop.permute.xlu1 %2745  ;;  %v2982_v30 = vld [vmem:[%s4216_s3 + $0x30] sm:$0xff]  }
  0x9d   :  { %v2743_v35 = vunpack.i.h.bf16 %v2741_v31  ;;  %v2742_v37 = vunpack.i.l.bf16 %v2741_v31  ;;  %v346_v40 = vpack.c.bf16 %v329_v34, %v328_v33  ;;  %v2748_v17 = vunpack.i.h.bf16 %v2746_v38  ;;  %1035 = vmatpush1.bf16.msra.mxu1 %v2977_v39 }
  0x9e   :  { %v2747_v13 = vunpack.i.l.bf16 %v2746_v38  ;;  %1036 = vmatprep.subr.bf16.mxu1 %v3085_v3 }
  0x9f   :  { %v304_v54 = vsel %vm284_vm1, %v3320_v59, %v2743_v35  ;;  %v303_v51 = vsel %vm284_vm1, %v3314_v57, %v2742_v37 }
  0xa0   :  { %v2751_v41 = vpop.permute.xlu0 %2750  ;;  %v330_v42 = vsel %vm311_vm2, %v303_v51, %v2747_v13  ;;  %v331_v43 = vsel %vm311_vm2, %v304_v54, %v2748_v17  ;;  %v2756_v47 = vpop.permute.xlu1 %2755  ;;  %v2983_v13 = vld [vmem:[%s4216_s3 + $0x38] sm:$0xff]  }
  0xa1   :  { %v2753_v45 = vunpack.i.h.bf16 %v2751_v41  ;;  %v2752_v46 = vunpack.i.l.bf16 %v2751_v41  ;;  %v2758_v50 = vunpack.i.h.bf16 %v2756_v47  ;;  %v2757_v52 = vunpack.i.l.bf16 %v2756_v47  ;;  %v2984_v47 = vld [vmem:[%s4216_s3 + $0x40] sm:$0xff]  }
  0xa2   :  { %2371 = vmatmul.mubr.msk.bf16.gmra.mrb[16].mxu0 %vm429_vm3, %v342_v49  ;;  %v347_v49 = vpack.c.bf16 %v331_v43, %v330_v42 }
  0xa3   :  { %558 = vmatprep.mubr.bf16.mxu0 %v3085_v3  ;;  %v306_v59 = vsel %vm284_vm1, %v3333_v1, %v2753_v45  ;;  %v305_v57 = vsel %vm284_vm1, %v3328_v62, %v2752_v46 }
  0xa4   :  { %v2761_v25 = vpop.permute.xlu0 %2760  ;;  %v332_v22 = vsel %vm311_vm2, %v305_v57, %v2757_v52  ;;  %v333_v53 = vsel %vm311_vm2, %v306_v59, %v2758_v50  ;;  %v2766_v0 = vpop.permute.xlu1 %2765 }
  0xa5   :  { %v2763_v55 = vunpack.i.h.bf16 %v2761_v25  ;;  %v2762_v56 = vunpack.i.l.bf16 %v2761_v25  ;;  %v348_v4 = vpack.c.bf16 %v333_v53, %v332_v22  ;;  %v2768_v58 = vunpack.i.h.bf16 %v2766_v0  ;;  %v2985_v25 = vld [vmem:[%s4216_s3 + $0x48] sm:$0x3f]  }
  0xa7   :  { %v308_v1 = vsel %vm284_vm1, %v3346_v12, %v2763_v55  ;;  %v307_v62 = vsel %vm284_vm1, %v3341_v10, %v2762_v56 }
  0xa8   :  { %v335_v63 = vsel %vm311_vm2, %v308_v1, %v2768_v58  ;;  %v2771_v29 = vpop.permute.xlu0 %2770  ;;  %v2776_v12 = vpop.permute.xlu1 %2775 }
  0xa9   :  { %v2773_v2 = vunpack.i.h.bf16 %v2771_v29  ;;  %v2772_v9 = vunpack.i.l.bf16 %v2771_v29  ;;  %v2778_v11 = vunpack.i.h.bf16 %v2776_v12  ;;  %v2777_v6 = vunpack.i.l.bf16 %v2776_v12 }
  0xaa   :  { %2372 = vmatmul.mubr.msk.bf16.gmra.mrb[20].mxu0 %vm429_vm3, %v343_v60  ;;  %v2767_v60 = vunpack.i.l.bf16 %v2766_v0  ;;  %v1030_v0 = vsel %vm1028_vm4, %v2985_v25, 0  ;;  %vm3097_vm4 = vmmov 0  }
  0xab   :  { %568 = vmatprep.mubr.bf16.mxu0 %v3085_v3  ;;  %v310_v10 = vsel %vm284_vm1, %v3359_v19, %v2773_v2  ;;  %v309_v5 = vsel %vm284_vm1, %v3354_v16, %v2772_v9  ;;  %v2978_v16 = vld [vmem:[%s4216_s3 + $0x10] sm:$0xff]   ;;  %v364_v19 = vlaneseq  ;;  %s3088_s3 = smov 27  }
  0xac   :  { %v334_v61 = vsel %vm311_vm2, %v307_v62, %v2767_v60  ;;  %v336_v14 = vsel %vm311_vm2, %v309_v5, %v2777_v6  ;;  %1037 = vmatpush1.bf16.msra.mxu1 %v2978_v16 }
  0xad   :  { %v349_v32 = vpack.c.bf16 %v335_v63, %v334_v61  ;;  %1038 = vmatprep.subr.bf16.mxu1 %v3085_v3  ;;  %v3494_v21 = vshrl.u32 %v364_v19, 7 }
  0xaf   :  { %v366_v24 = vsub.s32 0, %v3494_v21  ;;  %v370_v27 = vsub.s32 1, %v3494_v21 }
  0xb0   :  { %1039 = vmatpush1.bf16.msra.mxu1 %v2979_v36 }
  0xb1   :  { %1040 = vmatprep.subr.bf16.mxu1 %v3085_v3  ;;  %v3515_v28 = vrot.slane %v362_v26, %v370_v27 }
  0xb2   :  { %2373 = vmatmul.mubr.msk.bf16.gmra.mrb[24].mxu0 %vm429_vm3, %v344_v15  ;;  %v337_v15 = vsel %vm311_vm2, %v310_v10, %v2778_v11  ;;  %vm2196_vm2 = vcmask 1043456  }
  0xb3   :  { %578 = vmatprep.mubr.bf16.mxu0 %v3085_v3  ;;  %v350_v18 = vpack.c.bf16 %v337_v15, %v336_v14 }
  0xb4   :  { %1041 = vmatpush1.bf16.msra.mxu1 %v2980_v23 }
  0xb5   :  { %1042 = vmatprep.subr.bf16.mxu1 %v3085_v3 }
  0xb8   :  { %1043 = vmatpush1.bf16.msra.mxu1 %v2981_v8 }
  0xb9   :  { %1044 = vmatprep.subr.bf16.mxu1 %v3085_v3 }
  0xba   :  { %2374 = vmatmul.mubr.msk.bf16.gmra.mrb[28].mxu0 %vm429_vm3, %v345_v7  ;;  %v3511_v7 = vrot.slane %v362_v26, %v366_v24 }
  0xbb   :  { %588 = vmatprep.mubr.bf16.mxu0 %v3085_v3 }
  0xbc   :  { %1045 = vmatpush1.bf16.msra.mxu1 %v2982_v30 }
  0xbd   :  { %1046 = vmatprep.subr.bf16.mxu1 %v3085_v3 }
  0xc0   :  { %1047 = vmatpush1.bf16.msra.mxu1 %v2983_v13 }
  0xc1   :  { %1048 = vmatprep.subr.bf16.mxu1 %v3085_v3 }
  0xc2   :  { %2375 = vmatmul.mubr.msk.bf16.gmra.mrb[32].mxu0 %vm429_vm3, %v346_v40 }
  0xc3   :  { %598 = vmatprep.mubr.bf16.mxu0 %v3085_v3 }
  0xc4   :  { %1049 = vmatpush1.bf16.msra.mxu1 %v2984_v47 }
  0xc5   :  { %1050 = vmatprep.subr.bf16.mxu1 %v3085_v3 }
  0xc8   :  { %1051 = vmatpush1.bf16.msra.mxu1 %v1030_v0 }
  0xca   :  { %2376 = vmatmul.mubr.msk.bf16.gmra.mrb[36].mxu0 %vm429_vm3, %v347_v49 }
  0xcb   :  { %608 = vmatprep.mubr.bf16.mxu0 %v3085_v3 }
  0xd2   :  { %2377 = vmatmul.mubr.msk.bf16.gmra.mrb[40].mxu0 %vm429_vm3, %v348_v4 }
  0xd3   :  { %618 = vmatprep.mubr.bf16.mxu0 %v3085_v3 }
  0xda   :  { %2378 = vmatmul.mubr.msk.bf16.gmra.mrb[44].mxu0 %vm429_vm3, %v349_v32 }
  0xdb   :  { %628 = vmatprep.mubr.bf16.mxu0 %v3085_v3 }
  0xe2   :  { %2379 = vmatmul.mubr.msk.bf16.gmra.mrb[48].mxu0 %vm429_vm3, %v350_v18 }
 0x155   :  { %v510_v48 = vpop.f32.mrb[0].mxu0 }
 0x156   :  { %v511_v44 = vadd.f32 %v510_v48, %v3511_v7  ;;  %v512_v31 = vpop.f32.mrb[1].mxu0 }
 0x157   :  { %v513_v33 = vadd.f32 %v512_v31, %v3515_v28  ;;  %v514_v34 = vpop.f32.mrb[2].mxu0 }
 0x158   :  { %v515_v35 = vadd.f32 %v514_v34, %v3511_v7  ;;  %v516_v37 = vpop.f32.mrb[3].mxu0  ;;  %v639_v40 = vmax.f32 %v511_v44, 0.0 }
 0x159   :  { %v517_v38 = vadd.f32 %v516_v37, %v3515_v28  ;;  %v640_v54 = vmax.f32 %v513_v33, 0.0 }
 0x15a   :  { %v641_v17 = vmax.f32 %v515_v35, 0.0 }
 0x15b   :  { %v642_v51 = vmax.f32 %v517_v38, 0.0 }
 0x15c   :  { %v3529_v41 = vmax.f32 %v639_v40, %v641_v17 }
 0x15d   :  { %v3531_v42 = vmax.f32 %v640_v54, %v642_v51  ;;  %v520_v43 = vpop.f32.mrb[4].mxu0 }
 0x15e   :  { %v521_v45 = vadd.f32 %v520_v43, %v3511_v7  ;;  %v522_v46 = vpop.f32.mrb[5].mxu0 }
 0x15f   :  { %v523_v49 = vadd.f32 %v522_v46, %v3515_v28  ;;  %v524_v50 = vpop.f32.mrb[6].mxu0 }
 0x160   :  { %v525_v52 = vadd.f32 %v524_v50, %v3511_v7  ;;  %v526_v59 = vpop.f32.mrb[7].mxu0  ;;  %v643_v22 = vmax.f32 %v521_v45, 0.0 }
 0x161   :  { %v527_v57 = vadd.f32 %v526_v59, %v3515_v28  ;;  %v644_v55 = vmax.f32 %v523_v49, 0.0 }
 0x162   :  { %v645_v53 = vmax.f32 %v525_v52, 0.0 }
 0x163   :  { %v646_v56 = vmax.f32 %v527_v57, 0.0 }
 0x164   :  { %v3545_v4 = vmax.f32 %v643_v22, %v645_v53 }
 0x165   :  { %v3547_v58 = vmax.f32 %v644_v55, %v646_v56  ;;  %v530_v60 = vpop.f32.mrb[8].mxu0 }
 0x166   :  { %v531_v1 = vadd.f32 %v530_v60, %v3511_v7  ;;  %v532_v62 = vpop.f32.mrb[9].mxu0  ;;  %v2779_v61 = vpack.i.bf16 %v3545_v4, %v3529_v41 }
 0x167   :  { %v533_v63 = vadd.f32 %v532_v62, %v3515_v28  ;;  %v534_v32 = vpop.f32.mrb[10].mxu0  ;;  %v2784_v29 = vpack.i.bf16 %v3547_v58, %v3531_v42 }
 0x168   :  { %v535_v2 = vadd.f32 %v534_v32, %v3511_v7  ;;  %v536_v9 = vpop.f32.mrb[11].mxu0  ;;  %2780 = vrot.lane.b32.xlu1 %v2779_v61, %s3088_s3  ;;  %v647_v11 = vmax.f32 %v531_v1, 0.0 }
 0x169   :  { %v537_v12 = vadd.f32 %v536_v9, %v3515_v28  ;;  %2785 = vrot.lane.b32.xlu0 %v2784_v29, %s3089_s30  ;;  %v648_v10 = vmax.f32 %v533_v63, 0.0 }
 0x16a   :  { %v649_v6 = vmax.f32 %v535_v2, 0.0 }
 0x16b   :  { %v650_v5 = vmax.f32 %v537_v12, 0.0 }
 0x16c   :  { %v3559_v14 = vmax.f32 %v647_v11, %v649_v6 }
 0x16d   :  { %v3561_v15 = vmax.f32 %v648_v10, %v650_v5  ;;  %v540_v18 = vpop.f32.mrb[12].mxu0  ;;  %2790 = vrot.lane.b32.xlu0 %v2779_v61, %s3089_s30 }
 0x16e   :  { %v541_v20 = vadd.f32 %v540_v18, %v3511_v7  ;;  %v542_v39 = vpop.f32.mrb[13].mxu0 }
 0x16f   :  { %v543_v16 = vadd.f32 %v542_v39, %v3515_v28  ;;  %v544_v19 = vpop.f32.mrb[14].mxu0 }
 0x170   :  { %v545_v36 = vadd.f32 %v544_v19, %v3511_v7  ;;  %v546_v23 = vpop.f32.mrb[15].mxu0  ;;  %v651_v8 = vmax.f32 %v541_v20, 0.0 }
 0x171   :  { %v547_v26 = vadd.f32 %v546_v23, %v3515_v28  ;;  %v652_v48 = vmax.f32 %v543_v16, 0.0 }
 0x172   :  { %v653_v30 = vmax.f32 %v545_v36, 0.0 }
 0x173   :  { %v654_v44 = vmax.f32 %v547_v26, 0.0 }
 0x174   :  { %v3568_v31 = vmax.f32 %v651_v8, %v653_v30 }
 0x175   :  { %v3570_v33 = vmax.f32 %v652_v48, %v654_v44  ;;  %v550_v34 = vpop.f32.mrb[16].mxu0 }
 0x176   :  { %v551_v35 = vadd.f32 %v550_v34, %v3511_v7  ;;  %v552_v37 = vpop.f32.mrb[17].mxu0  ;;  %v2794_v38 = vpack.i.bf16 %v3568_v31, %v3559_v14 }
 0x177   :  { %v553_v40 = vadd.f32 %v552_v37, %v3515_v28  ;;  %v554_v17 = vpop.f32.mrb[18].mxu0  ;;  %v2799_v13 = vpack.i.bf16 %v3570_v33, %v3561_v15 }
 0x178   :  { %v555_v54 = vadd.f32 %v554_v17, %v3511_v7  ;;  %v556_v51 = vpop.f32.mrb[19].mxu0  ;;  %2795 = vrot.lane.b32.xlu0 %v2794_v38, %s3088_s3  ;;  %v655_v45 = vmax.f32 %v551_v35, 0.0 }
 0x179   :  { %v557_v43 = vadd.f32 %v556_v51, %v3515_v28  ;;  %2800 = vrot.lane.b32.xlu1 %v2799_v13, %s3089_s30  ;;  %v656_v47 = vmax.f32 %v553_v40, 0.0 }
 0x17a   :  { %v657_v46 = vmax.f32 %v555_v54, 0.0 }
 0x17b   :  { %v658_v49 = vmax.f32 %v557_v43, 0.0 }
 0x17c   :  { %v3582_v50 = vmax.f32 %v655_v45, %v657_v46 }
 0x17d   :  { %v3584_v52 = vmax.f32 %v656_v47, %v658_v49  ;;  %v560_v59 = vpop.f32.mrb[20].mxu0  ;;  %2805 = vrot.lane.b32.xlu1 %v2794_v38, %s3089_s30 }
 0x17e   :  { %v561_v57 = vadd.f32 %v560_v59, %v3511_v7  ;;  %v562_v25 = vpop.f32.mrb[21].mxu0 }
 0x17f   :  { %v563_v22 = vadd.f32 %v562_v25, %v3515_v28  ;;  %v564_v53 = vpop.f32.mrb[22].mxu0 }
 0x180   :  { %v565_v55 = vadd.f32 %v564_v53, %v3511_v7  ;;  %v566_v56 = vpop.f32.mrb[23].mxu0  ;;  %v659_v60 = vmax.f32 %v561_v57, 0.0 }
 0x181   :  { %v567_v0 = vadd.f32 %v566_v56, %v3515_v28  ;;  %v660_v62 = vmax.f32 %v563_v22, 0.0 }
 0x182   :  { %v661_v1 = vmax.f32 %v565_v55, 0.0 }
 0x183   :  { %v662_v61 = vmax.f32 %v567_v0, 0.0 }
 0x184   :  { %v3591_v63 = vmax.f32 %v659_v60, %v661_v1 }
 0x185   :  { %v3593_v32 = vmax.f32 %v660_v62, %v662_v61  ;;  %v570_v29 = vpop.f32.mrb[24].mxu0 }
 0x186   :  { %v571_v2 = vadd.f32 %v570_v29, %v3511_v7  ;;  %v572_v9 = vpop.f32.mrb[25].mxu0  ;;  %v2809_v12 = vpack.i.bf16 %v3591_v63, %v3582_v50 }
 0x187   :  { %v573_v11 = vadd.f32 %v572_v9, %v3515_v28  ;;  %v574_v6 = vpop.f32.mrb[26].mxu0  ;;  %v2814_v10 = vpack.i.bf16 %v3593_v32, %v3584_v52 }
 0x188   :  { %v575_v5 = vadd.f32 %v574_v6, %v3511_v7  ;;  %v576_v18 = vpop.f32.mrb[27].mxu0  ;;  %2810 = vrot.lane.b32.xlu1 %v2809_v12, %s3088_s3  ;;  %v663_v39 = vmax.f32 %v571_v2, 0.0 }
 0x189   :  { %v577_v20 = vadd.f32 %v576_v18, %v3515_v28  ;;  %2815 = vrot.lane.b32.xlu0 %v2814_v10, %s3089_s30  ;;  %v664_v19 = vmax.f32 %v573_v11, 0.0 }
 0x18a   :  { %v665_v16 = vmax.f32 %v575_v5, 0.0 }
 0x18b   :  { %v666_v36 = vmax.f32 %v577_v20, 0.0 }
 0x18c   :  { %v3605_v23 = vmax.f32 %v663_v39, %v665_v16 }
 0x18d   :  { %v3607_v26 = vmax.f32 %v664_v19, %v666_v36  ;;  %v580_v8 = vpop.f32.mrb[28].mxu0  ;;  %2820 = vrot.lane.b32.xlu0 %v2809_v12, %s3089_s30 }
 0x18e   :  { %v581_v30 = vadd.f32 %v580_v8, %v3511_v7  ;;  %v582_v48 = vpop.f32.mrb[29].mxu0 }
 0x18f   :  { %v583_v44 = vadd.f32 %v582_v48, %v3515_v28  ;;  %v584_v34 = vpop.f32.mrb[30].mxu0 }
 0x190   :  { %v585_v35 = vadd.f32 %v584_v34, %v3511_v7  ;;  %v586_v37 = vpop.f32.mrb[31].mxu0  ;;  %v667_v40 = vmax.f32 %v581_v30, 0.0 }
 0x191   :  { %v587_v38 = vadd.f32 %v586_v37, %v3515_v28  ;;  %v668_v13 = vmax.f32 %v583_v44, 0.0 }
 0x192   :  { %v669_v17 = vmax.f32 %v585_v35, 0.0 }
 0x193   :  { %v670_v54 = vmax.f32 %v587_v38, 0.0 }
 0x194   :  { %v3614_v51 = vmax.f32 %v667_v40, %v669_v17 }
 0x195   :  { %v3616_v43 = vmax.f32 %v668_v13, %v670_v54  ;;  %v590_v45 = vpop.f32.mrb[32].mxu0 }
 0x196   :  { %v591_v46 = vadd.f32 %v590_v45, %v3511_v7  ;;  %v592_v47 = vpop.f32.mrb[33].mxu0  ;;  %v2824_v49 = vpack.i.bf16 %v3614_v51, %v3605_v23 }
 0x197   :  { %v593_v59 = vadd.f32 %v592_v47, %v3515_v28  ;;  %v594_v57 = vpop.f32.mrb[34].mxu0  ;;  %v2829_v25 = vpack.i.bf16 %v3616_v43, %v3607_v26 }
 0x198   :  { %v595_v22 = vadd.f32 %v594_v57, %v3511_v7  ;;  %v596_v53 = vpop.f32.mrb[35].mxu0  ;;  %2825 = vrot.lane.b32.xlu0 %v2824_v49, %s3088_s3  ;;  %v671_v56 = vmax.f32 %v591_v46, 0.0 }
 0x199   :  { %v597_v55 = vadd.f32 %v596_v53, %v3515_v28  ;;  %2830 = vrot.lane.b32.xlu1 %v2829_v25, %s3089_s30  ;;  %v672_v60 = vmax.f32 %v593_v59, 0.0 }
 0x19a   :  { %v673_v0 = vmax.f32 %v595_v22, 0.0 }
 0x19b   :  { %v674_v1 = vmax.f32 %v597_v55, 0.0 }
 0x19c   :  { %v3628_v62 = vmax.f32 %v671_v56, %v673_v0 }
 0x19d   :  { %v3630_v61 = vmax.f32 %v672_v60, %v674_v1  ;;  %v600_v29 = vpop.f32.mrb[36].mxu0  ;;  %2835 = vrot.lane.b32.xlu1 %v2824_v49, %s3089_s30 }
 0x19e   :  { %v601_v2 = vadd.f32 %v600_v29, %v3511_v7  ;;  %v602_v9 = vpop.f32.mrb[37].mxu0 }
 0x19f   :  { %v603_v12 = vadd.f32 %v602_v9, %v3515_v28  ;;  %v604_v11 = vpop.f32.mrb[38].mxu0 }
 0x1a0   :  { %v605_v6 = vadd.f32 %v604_v11, %v3511_v7  ;;  %v606_v10 = vpop.f32.mrb[39].mxu0  ;;  %v675_v18 = vmax.f32 %v601_v2, 0.0 }
 0x1a1   :  { %v607_v5 = vadd.f32 %v606_v10, %v3515_v28  ;;  %v676_v39 = vmax.f32 %v603_v12, 0.0 }
 0x1a2   :  { %v677_v20 = vmax.f32 %v605_v6, 0.0 }
 0x1a3   :  { %v678_v16 = vmax.f32 %v607_v5, 0.0 }
 0x1a4   :  { %v3637_v19 = vmax.f32 %v675_v18, %v677_v20 }
 0x1a5   :  { %v3639_v36 = vmax.f32 %v676_v39, %v678_v16  ;;  %v610_v8 = vpop.f32.mrb[40].mxu0 }
 0x1a6   :  { %v611_v30 = vadd.f32 %v610_v8, %v3511_v7  ;;  %v612_v48 = vpop.f32.mrb[41].mxu0  ;;  %v2839_v44 = vpack.i.bf16 %v3637_v19, %v3628_v62 }
 0x1a7   :  { %v613_v34 = vadd.f32 %v612_v48, %v3515_v28  ;;  %v614_v35 = vpop.f32.mrb[42].mxu0  ;;  %v2844_v37 = vpack.i.bf16 %v3639_v36, %v3630_v61 }
 0x1a8   :  { %v615_v38 = vadd.f32 %v614_v35, %v3511_v7  ;;  %v616_v40 = vpop.f32.mrb[43].mxu0  ;;  %2840 = vrot.lane.b32.xlu1 %v2839_v44, %s3088_s3  ;;  %v679_v13 = vmax.f32 %v611_v30, 0.0 }
 0x1a9   :  { %v617_v17 = vadd.f32 %v616_v40, %v3515_v28  ;;  %2845 = vrot.lane.b32.xlu0 %v2844_v37, %s3089_s30  ;;  %v680_v45 = vmax.f32 %v613_v34, 0.0 }
 0x1aa   :  { %v681_v54 = vmax.f32 %v615_v38, 0.0 }
 0x1ab   :  { %v682_v46 = vmax.f32 %v617_v17, 0.0 }
 0x1ac   :  { %v3651_v47 = vmax.f32 %v679_v13, %v681_v54 }
 0x1ad   :  { %v3653_v49 = vmax.f32 %v680_v45, %v682_v46  ;;  %v620_v59 = vpop.f32.mrb[44].mxu0  ;;  %2850 = vrot.lane.b32.xlu0 %v2839_v44, %s3089_s30 }
 0x1ae   :  { %v621_v57 = vadd.f32 %v620_v59, %v3511_v7  ;;  %v622_v25 = vpop.f32.mrb[45].mxu0 }
 0x1af   :  { %v623_v22 = vadd.f32 %v622_v25, %v3515_v28  ;;  %v624_v53 = vpop.f32.mrb[46].mxu0 }
 0x1b0   :  { %v625_v55 = vadd.f32 %v624_v53, %v3511_v7  ;;  %v626_v56 = vpop.f32.mrb[47].mxu0  ;;  %v683_v60 = vmax.f32 %v621_v57, 0.0 }
 0x1b1   :  { %v627_v0 = vadd.f32 %v626_v56, %v3515_v28  ;;  %v684_v29 = vmax.f32 %v623_v22, 0.0 }
 0x1b2   :  { %v685_v1 = vmax.f32 %v625_v55, 0.0 }
 0x1b3   :  { %v686_v2 = vmax.f32 %v627_v0, 0.0 }
 0x1b4   :  { %v3660_v9 = vmax.f32 %v683_v60, %v685_v1 }
 0x1b5   :  { %v3662_v12 = vmax.f32 %v684_v29, %v686_v2  ;;  %v630_v10 = vpop.f32.mrb[48].mxu0 }
 0x1b6   :  { %v2854_v11 = vpack.i.bf16 %v3660_v9, %v3651_v47  ;;  %v631_v5 = vadd.f32 %v630_v10, %v3511_v7  ;;  %v632_v18 = vpop.f32.mrb[49].mxu0 }
 0x1b7   :  { %v2859_v6 = vpack.i.bf16 %v3662_v12, %v3653_v49  ;;  %v633_v20 = vadd.f32 %v632_v18, %v3515_v28  ;;  %v634_v39 = vpop.f32.mrb[50].mxu0 }
 0x1b8   :  { %2855 = vrot.lane.b32.xlu0 %v2854_v11, %s3088_s3  ;;  %v687_v8 = vmax.f32 %v631_v5, 0.0  ;;  %v635_v30 = vadd.f32 %v634_v39, %v3511_v7  ;;  %v636_v48 = vpop.f32.mrb[51].mxu0 }
 0x1b9   :  { %2860 = vrot.lane.b32.xlu1 %v2859_v6, %s3089_s30  ;;  %v688_v37 = vmax.f32 %v633_v20, 0.0  ;;  %v637_v38 = vadd.f32 %v636_v48, %v3515_v28 }
 0x1ba   :  { %v689_v13 = vmax.f32 %v635_v30, 0.0 }
 0x1bb   :  { %v690_v54 = vmax.f32 %v637_v38, 0.0 }
 0x1bc   :  { %v3677_v59 = vmax.f32 %v687_v8, %v689_v13 }
 0x1bd   :  { %2865 = vrot.lane.b32.xlu1 %v2854_v11, %s3089_s30  ;;  %v3681_v22 = vmax.f32 %v688_v37, %v690_v54 }
 0x1bf   :  { %v2869_v56 = vpack.i.bf16 %v3677_v59, %v3681_v22 }
 0x1c1   :  { %859 = vrot.lane.b32.xlu1 %v3677_v59, %s3088_s3  ;;  %2870 = vrot.lane.b32.xlu0 %v2869_v56, %s3089_s30 }
 0x1da   :  { %v2781_v16 = vpop.permute.xlu1 %2780 }
 0x1db   :  { %v2783_v44 = vunpack.i.h.bf16 %v2781_v16  ;;  %v2782_v34 = vunpack.i.l.bf16 %v2781_v16  ;;  %v2786_v35 = vpop.permute.xlu0 %2785 }
 0x1dc   :  { %v2788_v40 = vunpack.i.h.bf16 %v2786_v35  ;;  %v2787_v17 = vunpack.i.l.bf16 %v2786_v35 }
 0x1de   :  { %v875_v45 = vsel %vm874_vm5, %v2787_v17, %v2782_v34  ;;  %v876_v46 = vsel %vm874_vm5, %v2788_v40, %v2783_v44 }
 0x1df   :  { %v2791_v57 = vpop.permute.xlu0 %2790  ;;  %v889_v7 = vmax.f32 %v3531_v42, %v875_v45  ;;  %v891_v25 = vmax.f32 %v3547_v58, %v876_v46 }
 0x1e0   :  { %v2793_v53 = vunpack.i.h.bf16 %v2791_v57  ;;  %v2792_v28 = vunpack.i.l.bf16 %v2791_v57 }
 0x1e1   :  { %v915_v55 = vpack.c.bf16 %v891_v25, %v889_v7 }
 0x1e2   :  { %v797_v0 = vsel %vm795_vm6, %v2793_v53, %v2788_v40  ;;  %v796_v60 = vsel %vm795_vm6, %v2792_v28, %v2787_v17 }
 0x1e3   :  { %2390 = vmatprep.mubr.msk.bf16.mxu1 %vm284_vm1, %v915_v55  ;;  %v888_v42 = vmax.f32 %v3529_v41, %v796_v60  ;;  %v890_v58 = vmax.f32 %v3545_v4, %v797_v0 }
 0x1e5   :  { %v914_v1 = vpack.c.bf16 %v890_v58, %v888_v42 }
 0x1e7   :  { %1065 = vmatmul.mubr.bf16.vlgmr.msra.gmra.mrb[0].mxu1 %v914_v1 }
 0x1ea   :  { %v2796_v29 = vpop.permute.xlu0 %2795 }
 0x1eb   :  { %v2798_v2 = vunpack.i.h.bf16 %v2796_v29  ;;  %v2797_v11 = vunpack.i.l.bf16 %v2796_v29  ;;  %v2801_v6 = vpop.permute.xlu1 %2800 }
 0x1ec   :  { %v2803_v10 = vunpack.i.h.bf16 %v2801_v6  ;;  %v2802_v5 = vunpack.i.l.bf16 %v2801_v6 }
 0x1ee   :  { %v878_v18 = vsel %vm874_vm5, %v2803_v10, %v2798_v2  ;;  %v877_v20 = vsel %vm874_vm5, %v2802_v5, %v2797_v11 }
 0x1ef   :  { %v895_v39 = vmax.f32 %v3570_v33, %v878_v18  ;;  %v893_v41 = vmax.f32 %v3561_v15, %v877_v20  ;;  %v2806_v16 = vpop.permute.xlu1 %2805 }
 0x1f0   :  { %v2808_v4 = vunpack.i.h.bf16 %v2806_v16  ;;  %v2807_v8 = vunpack.i.l.bf16 %v2806_v16 }
 0x1f1   :  { %v917_v30 = vpack.c.bf16 %v895_v39, %v893_v41 }
 0x1f2   :  { %v798_v48 = vsel %vm795_vm6, %v2807_v8, %v2802_v5  ;;  %v799_v44 = vsel %vm795_vm6, %v2808_v4, %v2803_v10 }
 0x1f3   :  { %2391 = vmatprep.mubr.msk.bf16.mxu1 %vm284_vm1, %v917_v30  ;;  %v892_v34 = vmax.f32 %v3559_v14, %v798_v48  ;;  %v894_v35 = vmax.f32 %v3568_v31, %v799_v44 }
 0x1f5   :  { %v916_v37 = vpack.c.bf16 %v894_v35, %v892_v34 }
 0x1f7   :  { %1073 = vmatmul.mubr.bf16.gmra.mrb[4].mxu1 %v916_v37 }
 0x1fa   :  { %v2811_v38 = vpop.permute.xlu1 %2810 }
 0x1fb   :  { %v2813_v33 = vunpack.i.h.bf16 %v2811_v38  ;;  %v2812_v40 = vunpack.i.l.bf16 %v2811_v38  ;;  %v2816_v15 = vpop.permute.xlu0 %2815 }
 0x1fc   :  { %v2818_v17 = vunpack.i.h.bf16 %v2816_v15  ;;  %v2817_v13 = vunpack.i.l.bf16 %v2816_v15 }
 0x1fe   :  { %v879_v54 = vsel %vm874_vm5, %v2817_v13, %v2812_v40  ;;  %v880_v45 = vsel %vm874_vm5, %v2818_v17, %v2813_v33 }
 0x1ff   :  { %v897_v46 = vmax.f32 %v3584_v52, %v879_v54  ;;  %v899_v57 = vmax.f32 %v3593_v32, %v880_v45  ;;  %v2821_v7 = vpop.permute.xlu0 %2820 }
 0x200   :  { %v2823_v14 = vunpack.i.h.bf16 %v2821_v7  ;;  %v2822_v25 = vunpack.i.l.bf16 %v2821_v7 }
 0x201   :  { %v919_v31 = vpack.c.bf16 %v899_v57, %v897_v46 }
 0x202   :  { %v800_v53 = vsel %vm795_vm6, %v2822_v25, %v2817_v13  ;;  %v801_v28 = vsel %vm795_vm6, %v2823_v14, %v2818_v17 }
 0x203   :  { %2392 = vmatprep.mubr.msk.bf16.mxu1 %vm284_vm1, %v919_v31  ;;  %v896_v55 = vmax.f32 %v3582_v50, %v800_v53  ;;  %v898_v56 = vmax.f32 %v3591_v63, %v801_v28 }
 0x205   :  { %v918_v0 = vpack.c.bf16 %v898_v56, %v896_v55 }
 0x207   :  { %1081 = vmatmul.mubr.bf16.gmra.mrb[8].mxu1 %v918_v0 }
 0x20a   :  { %v2826_v60 = vpop.permute.xlu0 %2825 }
 0x20b   :  { %v2828_v52 = vunpack.i.h.bf16 %v2826_v60  ;;  %v2827_v42 = vunpack.i.l.bf16 %v2826_v60  ;;  %v2831_v32 = vpop.permute.xlu1 %2830 }
 0x20c   :  { %v2833_v58 = vunpack.i.h.bf16 %v2831_v32  ;;  %v2832_v1 = vunpack.i.l.bf16 %v2831_v32 }
 0x20e   :  { %v882_v29 = vsel %vm874_vm5, %v2833_v58, %v2828_v52  ;;  %v881_v2 = vsel %vm874_vm5, %v2832_v1, %v2827_v42 }
 0x20f   :  { %v903_v11 = vmax.f32 %v3616_v43, %v882_v29  ;;  %v901_v6 = vmax.f32 %v3607_v26, %v881_v2  ;;  %v2836_v10 = vpop.permute.xlu1 %2835 }
 0x210   :  { %v2838_v50 = vunpack.i.h.bf16 %v2836_v10  ;;  %v2837_v5 = vunpack.i.l.bf16 %v2836_v10 }
 0x211   :  { %v921_v63 = vpack.c.bf16 %v903_v11, %v901_v6 }
 0x212   :  { %v802_v18 = vsel %vm795_vm6, %v2837_v5, %v2832_v1  ;;  %v803_v20 = vsel %vm795_vm6, %v2838_v50, %v2833_v58  ;;  %v2994_v50 = vld [vmem:[%s4218_s4 + $0x24] ss:$8 sps:$4 sm:$0xff]   ;;  %v2992_v5 = vld [vmem:[%s4218_s4 + $0x20] ss:$8 sps:$4 sm:$0xff]  }
 0x213   :  { %2393 = vmatprep.mubr.msk.bf16.mxu1 %vm284_vm1, %v921_v63  ;;  %v900_v39 = vmax.f32 %v3605_v23, %v802_v18  ;;  %v902_v41 = vmax.f32 %v3614_v51, %v803_v20  ;;  %v2997_v63 = vld [vmem:[%s4218_s4 + $0x34] ss:$8 sps:$4 sm:$0xff]   ;;  %v2995_v18 = vld [vmem:[%s4218_s4 + $0x30] ss:$8 sps:$4 sm:$0xff]   ;;  %v3000_v20 = vld [vmem:[%s4218_s4 + $0x44] ss:$8 sps:$4 sm:$0xff]  }
 0x215   :  { %v920_v16 = vpack.c.bf16 %v902_v41, %v900_v39  ;;  %v2998_v39 = vld [vmem:[%s4218_s4 + $0x40] ss:$8 sps:$4 sm:$0xff]   ;;  %v3003_v41 = vld [vmem:[%s4218_s4 + $0x54] ss:$8 sps:$4 sm:$0xff]  }
 0x217   :  { %1089 = vmatmul.mubr.bf16.gmra.mrb[12].mxu1 %v920_v16  ;;  %v3001_v16 = vld [vmem:[%s4218_s4 + $0x50] ss:$8 sps:$4 sm:$0xff]  }
 0x21a   :  { %v2841_v4 = vpop.permute.xlu1 %2840 }
 0x21b   :  { %v2843_v43 = vunpack.i.h.bf16 %v2841_v4  ;;  %v2842_v8 = vunpack.i.l.bf16 %v2841_v4  ;;  %v2846_v26 = vpop.permute.xlu0 %2845  ;;  %v3006_v4 = vld [vmem:[%s4218_s4 + $0x64] ss:$8 sps:$4 sm:$0xff]  }
 0x21c   :  { %v2848_v30 = vunpack.i.h.bf16 %v2846_v26  ;;  %v2847_v48 = vunpack.i.l.bf16 %v2846_v26  ;;  %v3007_v26 = vld [vmem:[%s4218_s4 + $0x70] ss:$8 sps:$4 sm:$0xff]  }
 0x21e   :  { %v883_v44 = vsel %vm874_vm5, %v2847_v48, %v2842_v8  ;;  %v884_v34 = vsel %vm874_vm5, %v2848_v30, %v2843_v43  ;;  %v3004_v43 = vld [vmem:[%s4218_s4 + $0x60] ss:$8 sps:$4 sm:$0xff]   ;;  %v3009_v8 = vld [vmem:[%s4218_s4 + $0x74] ss:$8 sps:$4 sm:$0xff]  }
 0x21f   :  { %v905_v35 = vmax.f32 %v3630_v61, %v883_v44  ;;  %v907_v37 = vmax.f32 %v3639_v36, %v884_v34  ;;  %v2851_v38 = vpop.permute.xlu0 %2850  ;;  %v3015_v44 = vld [vmem:[%s4218_s4 + $0x94] ss:$8 sps:$4 sm:$0xff]   ;;  %v3013_v34 = vld [vmem:[%s4218_s4 + $0x90] ss:$8 sps:$4 sm:$0xff]  }
 0x220   :  { %v2853_v23 = vunpack.i.h.bf16 %v2851_v38  ;;  %v2852_v33 = vunpack.i.l.bf16 %v2851_v38  ;;  %v3021_v38 = vld [vmem:[%s4218_s4 + $0xb4] ss:$8 sps:$4 sm:$0xff]  }
 0x221   :  { %v923_v51 = vpack.c.bf16 %v907_v37, %v905_v35  ;;  %v3018_v35 = vld [vmem:[%s4218_s4 + $0xa4] ss:$8 sps:$4 sm:$0xff]   ;;  %v3016_v37 = vld [vmem:[%s4218_s4 + $0xa0] ss:$8 sps:$4 sm:$0xff]  }
 0x222   :  { %v804_v40 = vsel %vm795_vm6, %v2852_v33, %v2847_v48  ;;  %v805_v15 = vsel %vm795_vm6, %v2853_v23, %v2848_v30  ;;  %v3012_v30 = vld [vmem:[%s4218_s4 + $0x84] ss:$8 sps:$4 sm:$0xff]   ;;  %v3010_v48 = vld [vmem:[%s4218_s4 + $0x80] ss:$8 sps:$4 sm:$0xff]   ;;  %v3019_v23 = vld [vmem:[%s4218_s4 + $0xb0] ss:$8 sps:$4 sm:$0xff]  }
 0x223   :  { %2394 = vmatprep.mubr.msk.bf16.mxu1 %vm284_vm1, %v923_v51  ;;  %v904_v17 = vmax.f32 %v3628_v62, %v804_v40  ;;  %v906_v13 = vmax.f32 %v3637_v19, %v805_v15  ;;  %v3024_v33 = vld [vmem:[%s4218_s4 + $0xc4] ss:$8 sps:$4 sm:$0xff]   ;;  %v3022_v51 = vld [vmem:[%s4218_s4 + $0xc0] ss:$8 sps:$4 sm:$0xff]  }
 0x225   :  { %v922_v54 = vpack.c.bf16 %v906_v13, %v904_v17 }
 0x227   :  { %1097 = vmatmul.mubr.bf16.gmra.mrb[16].mxu1 %v922_v54  ;;  %v3027_v54 = vld [vmem:[%s4218_s4 + $0xd4] ss:$8 sps:$4 sm:$0xff]  }
 0x22a   :  { %v2856_v45 = vpop.permute.xlu0 %2855 }
 0x22b   :  { %v2858_v61 = vunpack.i.h.bf16 %v2856_v45  ;;  %v2857_v46 = vunpack.i.l.bf16 %v2856_v45  ;;  %v2861_v36 = vpop.permute.xlu1 %2860  ;;  %v3025_v45 = vld [vmem:[%s4218_s4 + $0xd0] ss:$8 sps:$4 sm:$0xff]  }
 0x22c   :  { %v2863_v57 = vunpack.i.h.bf16 %v2861_v36  ;;  %v2862_v7 = vunpack.i.l.bf16 %v2861_v36 }
 0x22e   :  { %v886_v14 = vsel %vm874_vm5, %v2863_v57, %v2858_v61  ;;  %v885_v25 = vsel %vm874_vm5, %v2862_v7, %v2857_v46  ;;  %v3028_v61 = vld [vmem:[%s4218_s4 + $0xe4] ss:$8 sps:$4 sm:$0x1f]   ;;  %v3030_v46 = vld [vmem:[%s4218_s4 + $0xe0] ss:$8 sps:$4 sm:$0x1f]  }
 0x22f   :  { %v911_v31 = vmax.f32 %v3662_v12, %v886_v14  ;;  %v909_v53 = vmax.f32 %v3653_v49, %v885_v25  ;;  %v2866_v28 = vpop.permute.xlu1 %2865  ;;  %v1444_v36 = vsel %vm1442_vm7, %v3030_v46, 0 }
 0x230   :  { %v2868_v62 = vunpack.i.h.bf16 %v2866_v28  ;;  %v2867_v55 = vunpack.i.l.bf16 %v2866_v28 }
 0x231   :  { %v925_v19 = vpack.c.bf16 %v911_v31, %v909_v53 }
 0x232   :  { %v806_v56 = vsel %vm795_vm6, %v2867_v55, %v2862_v7  ;;  %v807_v0 = vsel %vm795_vm6, %v2868_v62, %v2863_v57 }
 0x233   :  { %2395 = vmatprep.mubr.msk.bf16.mxu1 %vm284_vm1, %v925_v19  ;;  %v908_v60 = vmax.f32 %v3651_v47, %v806_v56  ;;  %v910_v52 = vmax.f32 %v3660_v9, %v807_v0  ;;  %v2871_v32 = vpop.permute.xlu0 %2870  ;;  %v860_v12 = vpop.permute.xlu1 %859  ;;  %v2988_v47 = vld [vmem:[%s4218_s4 + $0x4] ss:$8 sps:$4 sm:$0xff]   ;;  %v2986_v9 = vld [vmem:[%s4218_s4] ss:$8 sps:$4 sm:$0xff]  }
 0x234   :  { %v2873_v58 = vunpack.i.h.bf16 %v2871_v32  ;;  %v2872_v49 = vunpack.i.l.bf16 %v2871_v32  ;;  %1449 = vmatprep.subr.bf16.mxu1 %v2988_v47 }
 0x235   :  { %v924_v42 = vpack.c.bf16 %v910_v52, %v908_v60  ;;  %1450 = vmatpush1.bf16.msra.mxu1 %v2986_v9 }
 0x236   :  { %v887_v1 = vsel %vm874_vm5, %v2872_v49, %v860_v12  ;;  %v808_v2 = vsel %vm795_vm6, %v2873_v58, %v2872_v49  ;;  %vm2192_vm5 = vcmask 982016  }
 0x237   :  { %1105 = vmatmul.mubr.bf16.gmra.mrb[20].mxu1 %v924_v42  ;;  %v913_v29 = vmax.f32 %v3681_v22, %v887_v1  ;;  %v912_v11 = vmax.f32 %v3677_v59, %v808_v2  ;;  %v2991_v22 = vld [vmem:[%s4218_s4 + $0x14] ss:$8 sps:$4 sm:$0xff]   ;;  %v2989_v59 = vld [vmem:[%s4218_s4 + $0x10] ss:$8 sps:$4 sm:$0xff]  }
 0x238   :  { %1451 = vmatprep.subr.bf16.mxu1 %v2991_v22 }
 0x239   :  { %v927_v6 = vpack.c.bf16 %v913_v29, %v913_v29  ;;  %v926_v10 = vpack.c.bf16 %v912_v11, %v912_v11  ;;  %1452 = vmatpush1.bf16.msra.mxu1 %v2989_v59 }
 0x23a   :  { %1453 = vmatprep.subr.bf16.mxu1 %v2994_v50 }
 0x23b   :  { %2396 = vmatprep.mubr.msk.bf16.mxu1 %vm284_vm1, %v927_v6 }
 0x23d   :  { %1454 = vmatpush1.bf16.msra.mxu1 %v2992_v5 }
 0x23e   :  { %1455 = vmatprep.subr.bf16.mxu1 %v2997_v63 }
 0x23f   :  { %1113 = vmatmul.mubr.bf16.gmra.mrb[24].mxu1 %v926_v10 }
 0x241   :  { %1456 = vmatpush1.bf16.msra.mxu1 %v2995_v18 }
 0x242   :  { %1457 = vmatprep.subr.bf16.mxu1 %v3000_v20 }
 0x245   :  { %1458 = vmatpush1.bf16.msra.mxu1 %v2998_v39 }
 0x246   :  { %1459 = vmatprep.subr.bf16.mxu1 %v3003_v41 }
 0x249   :  { %1460 = vmatpush1.bf16.msra.mxu1 %v3001_v16 }
 0x24a   :  { %1461 = vmatprep.subr.bf16.mxu1 %v3006_v4 }
 0x24d   :  { %1462 = vmatpush1.bf16.msra.mxu1 %v3004_v43 }
 0x24e   :  { %1463 = vmatprep.subr.bf16.mxu1 %v3009_v8 }
 0x251   :  { %1464 = vmatpush1.bf16.msra.mxu1 %v3007_v26 }
 0x252   :  { %1465 = vmatprep.subr.bf16.mxu1 %v3012_v30 }
 0x255   :  { %1466 = vmatpush1.bf16.msra.mxu1 %v3010_v48 }
 0x256   :  { %1467 = vmatprep.subr.bf16.mxu1 %v3015_v44 }
 0x259   :  { %1468 = vmatpush1.bf16.msra.mxu1 %v3013_v34 }
 0x25a   :  { %1469 = vmatprep.subr.bf16.mxu1 %v3018_v35 }
 0x25d   :  { %1470 = vmatpush1.bf16.msra.mxu1 %v3016_v37 }
 0x25e   :  { %1471 = vmatprep.subr.bf16.mxu1 %v3021_v38 }
 0x261   :  { %1472 = vmatpush1.bf16.msra.mxu1 %v3019_v23 }
 0x262   :  { %1473 = vmatprep.subr.bf16.mxu1 %v3024_v33 }
 0x265   :  { %1474 = vmatpush1.bf16.msra.mxu1 %v3022_v51 }
 0x266   :  { %1475 = vmatprep.subr.bf16.mxu1 %v3027_v54 }
 0x269   :  { %1476 = vmatpush1.bf16.msra.mxu1 %v3025_v45 }
 0x26a   :  { %2427 = vmatprep.subr.msk.bf16.mxu1 %vm1442_vm7, %v3028_v61 }
 0x26d   :  { %1478 = vmatpush1.bf16.msra.mxu1 %v1444_v36 }
 0x2ba   :  { %v3821_v40 = vpop.f32.mrb[0].mxu1 }
 0x2bb   :  { %v1068_v15 = vpop.f32.mrb[1].mxu1 }
 0x2bc   :  { %v3823_v17 = vpop.f32.mrb[2].mxu1 }
 0x2bd   :  { %v1071_v13 = vpop.f32.mrb[3].mxu1 }
 0x2ca   :  { %v3837_v57 = vpop.f32.mrb[4].mxu1 }
 0x2cb   :  { %v2874_v7 = vpack.i.bf16 %v3837_v57, %v3823_v17  ;;  %v1076_v14 = vpop.f32.mrb[5].mxu1 }
 0x2cc   :  { %v3841_v25 = vpop.f32.mrb[6].mxu1 }
 0x2cd   :  { %v2879_v31 = vpack.i.bf16 %v3841_v25, %v3837_v57  ;;  %2875 = vrot.lane.b32.xlu0 %v2874_v7, %s3090_s18  ;;  %v1079_v53 = vpop.f32.mrb[7].mxu1 }
 0x2cf   :  { %2880 = vrot.lane.b32.xlu1 %v2879_v31, %s3086_s16 }
 0x2da   :  { %v3847_v28 = vpop.f32.mrb[8].mxu1 }
 0x2db   :  { %v2884_v62 = vpack.i.bf16 %v3847_v28, %v3841_v25  ;;  %v1084_v55 = vpop.f32.mrb[9].mxu1 }
 0x2dc   :  { %v3851_v19 = vpop.f32.mrb[10].mxu1 }
 0x2dd   :  { %v2889_v56 = vpack.i.bf16 %v3851_v19, %v3847_v28  ;;  %2885 = vrot.lane.b32.xlu0 %v2884_v62, %s3090_s18  ;;  %v1087_v0 = vpop.f32.mrb[11].mxu1 }
 0x2df   :  { %2890 = vrot.lane.b32.xlu1 %v2889_v56, %s3086_s16 }
 0x2ea   :  { %v3857_v60 = vpop.f32.mrb[12].mxu1 }
 0x2eb   :  { %v2894_v52 = vpack.i.bf16 %v3857_v60, %v3851_v19  ;;  %v1092_v42 = vpop.f32.mrb[13].mxu1 }
 0x2ec   :  { %v3861_v32 = vpop.f32.mrb[14].mxu1 }
 0x2ed   :  { %v2899_v12 = vpack.i.bf16 %v3861_v32, %v3857_v60  ;;  %2895 = vrot.lane.b32.xlu0 %v2894_v52, %s3090_s18  ;;  %v1095_v58 = vpop.f32.mrb[15].mxu1 }
 0x2ef   :  { %2900 = vrot.lane.b32.xlu1 %v2899_v12, %s3086_s16 }
 0x2fa   :  { %v3867_v49 = vpop.f32.mrb[16].mxu1 }
 0x2fb   :  { %v2904_v1 = vpack.i.bf16 %v3867_v49, %v3861_v32  ;;  %v1100_v29 = vpop.f32.mrb[17].mxu1 }
 0x2fc   :  { %v3871_v2 = vpop.f32.mrb[18].mxu1 }
 0x2fd   :  { %v2909_v11 = vpack.i.bf16 %v3871_v2, %v3867_v49  ;;  %2905 = vrot.lane.b32.xlu0 %v2904_v1, %s3090_s18  ;;  %v1103_v6 = vpop.f32.mrb[19].mxu1 }
 0x2ff   :  { %2910 = vrot.lane.b32.xlu1 %v2909_v11, %s3086_s16 }
 0x30a   :  { %v3877_v10 = vpop.f32.mrb[20].mxu1 }
 0x30b   :  { %v2914_v47 = vpack.i.bf16 %v3877_v10, %v3871_v2  ;;  %v1108_v9 = vpop.f32.mrb[21].mxu1 }
 0x30c   :  { %v3881_v22 = vpop.f32.mrb[22].mxu1 }
 0x30d   :  { %v2919_v59 = vpack.i.bf16 %v3881_v22, %v3877_v10  ;;  %2915 = vrot.lane.b32.xlu0 %v2914_v47, %s3090_s18  ;;  %v1111_v50 = vpop.f32.mrb[23].mxu1 }
 0x30f   :  { %2920 = vrot.lane.b32.xlu1 %v2919_v59, %s3086_s16 }
 0x312   :  { %v3887_v5 = vpop.f32.mrb[24].mxu1 }
 0x313   :  { %v1116_v63 = vpop.f32.mrb[25].mxu1 }
 0x314   :  { %v1117_v18 = vpop.f32.mrb[26].mxu1 }
 0x315   :  { %v1118_v20 = vpop.f32.mrb[27].mxu1 }
 0x33f   :  { %v2876_v39 = vpop.permute.xlu0 %2875 }
 0x340   :  { %v2878_v41 = vunpack.i.h.bf16 %v2876_v39  ;;  %v2877_v16 = vunpack.i.l.bf16 %v2876_v39 }
 0x341   :  { %v2881_v4 = vpop.permute.xlu1 %2880 }
 0x342   :  { %v1200_v43 = vsel %vm1198_vm8, %v3823_v17, %v2878_v41  ;;  %v1199_v8 = vsel %vm1198_vm8, %v3821_v40, %v2877_v16  ;;  %v2883_v26 = vunpack.i.h.bf16 %v2881_v4  ;;  %v2882_v30 = vunpack.i.l.bf16 %v2881_v4 }
 0x343   :  { %v1221_v48 = vpack.c.bf16 %v1200_v43, %v1199_v8  ;;  %v3031_v8 = vld [vmem:[%s4219_s6] sm:$0xff]  }
 0x344   :  { %v1211_v44 = vsel %vm284_vm1, %v2878_v41, %v2883_v26  ;;  %v1210_v34 = vsel %vm284_vm1, %v2877_v16, %v2882_v30  ;;  %1749 = vmatpush1.bf16.msra.mxu0 %v3031_v8  ;;  %v3034_v26 = vld [vmem:[%s4219_s6 + $0x18] sm:$0xff]   ;;  %v3035_v30 = vld [vmem:[%s4219_s6 + $0x20] sm:$0xff]  }
 0x345   :  { %v1222_v35 = vpack.c.bf16 %v1211_v44, %v1210_v34  ;;  %1750 = vmatprep.subr.bf16.mxu0 %v3085_v3  ;;  %v3037_v44 = vld [vmem:[%s4219_s6 + $0x30] sm:$0xff]   ;;  %v3038_v34 = vld [vmem:[%s4219_s6 + $0x38] sm:$0xff]  }
 0x347   :  { %2428 = vmatprep.mubr.msk.bf16.mxu1 %vm1423_vm9, %v1222_v35  ;;  %v1263_v35 = vld [vmem:[%s4220_s5] sm:$0x3] }
 0x348   :  { %1482 = vmatmul.mubr.bf16.vlgmr.msra.gmra.mrb[28].mxu1 %v1221_v48  ;;  %v3036_v48 = vld [vmem:[%s4219_s6 + $0x28] sm:$0xff]  }
 0x34f   :  { %v2886_v37 = vpop.permute.xlu0 %2885 }
 0x350   :  { %v2888_v38 = vunpack.i.h.bf16 %v2886_v37  ;;  %v2887_v23 = vunpack.i.l.bf16 %v2886_v37  ;;  %v3961_v37 = vrot.slane %v1263_v35, %v366_v24 }
 0x351   :  { %v2891_v33 = vpop.permute.xlu1 %2890 }
 0x352   :  { %v2893_v51 = vunpack.i.h.bf16 %v2891_v33  ;;  %v2892_v15 = vunpack.i.l.bf16 %v2891_v33  ;;  %v1201_v40 = vsel %vm1198_vm8, %v3837_v57, %v2887_v23  ;;  %v1202_v17 = vsel %vm1198_vm8, %v3841_v25, %v2888_v38 }
 0x353   :  { %v1223_v13 = vpack.c.bf16 %v1202_v17, %v1201_v40 }
 0x354   :  { %v1213_v54 = vsel %vm284_vm1, %v2888_v38, %v2893_v51  ;;  %v1212_v45 = vsel %vm284_vm1, %v2887_v23, %v2892_v15  ;;  %v3965_v38 = vrot.slane %v1263_v35, %v370_v27  ;;  %v3039_v27 = vld [vmem:[%s4219_s6 + $0x40] sm:$0xff]  }
 0x355   :  { %v1224_v61 = vpack.c.bf16 %v1213_v54, %v1212_v45 }
 0x357   :  { %2429 = vmatprep.mubr.msk.bf16.mxu1 %vm1423_vm9, %v1224_v61 }
 0x358   :  { %1492 = vmatmul.mubr.bf16.gmra.mrb[32].mxu1 %v1223_v13 }
 0x35f   :  { %v2896_v46 = vpop.permute.xlu0 %2895 }
 0x360   :  { %v2898_v36 = vunpack.i.h.bf16 %v2896_v46  ;;  %v2897_v7 = vunpack.i.l.bf16 %v2896_v46 }
 0x361   :  { %v2901_v14 = vpop.permute.xlu1 %2900 }
 0x362   :  { %v2903_v31 = vunpack.i.h.bf16 %v2901_v14  ;;  %v2902_v53 = vunpack.i.l.bf16 %v2901_v14  ;;  %v1203_v57 = vsel %vm1198_vm8, %v3847_v28, %v2897_v7  ;;  %v1204_v25 = vsel %vm1198_vm8, %v3851_v19, %v2898_v36 }
 0x363   :  { %v1225_v62 = vpack.c.bf16 %v1204_v25, %v1203_v57 }
 0x364   :  { %v1215_v55 = vsel %vm284_vm1, %v2898_v36, %v2903_v31  ;;  %v1214_v56 = vsel %vm284_vm1, %v2897_v7, %v2902_v53  ;;  %v3040_v53 = vld [vmem:[%s4219_s6 + $0x48] sm:$0xff]  }
 0x365   :  { %v1226_v0 = vpack.c.bf16 %v1215_v55, %v1214_v56 }
 0x367   :  { %2430 = vmatprep.mubr.msk.bf16.mxu1 %vm1423_vm9, %v1226_v0 }
 0x368   :  { %1502 = vmatmul.mubr.bf16.gmra.mrb[36].mxu1 %v1225_v62 }
 0x36f   :  { %v2906_v52 = vpop.permute.xlu0 %2905 }
 0x370   :  { %v2908_v42 = vunpack.i.h.bf16 %v2906_v52  ;;  %v2907_v12 = vunpack.i.l.bf16 %v2906_v52 }
 0x371   :  { %v2911_v58 = vpop.permute.xlu1 %2910 }
 0x372   :  { %v2913_v1 = vunpack.i.h.bf16 %v2911_v58  ;;  %v2912_v29 = vunpack.i.l.bf16 %v2911_v58  ;;  %v1205_v28 = vsel %vm1198_vm8, %v3857_v60, %v2907_v12  ;;  %v1206_v19 = vsel %vm1198_vm8, %v3861_v32, %v2908_v42 }
 0x373   :  { %v1227_v11 = vpack.c.bf16 %v1206_v19, %v1205_v28 }
 0x374   :  { %v1217_v6 = vsel %vm284_vm1, %v2908_v42, %v2913_v1  ;;  %v1216_v47 = vsel %vm284_vm1, %v2907_v12, %v2912_v29  ;;  %v3041_v42 = vld [vmem:[%s4219_s6 + $0x50] sm:$0xff]  }
 0x375   :  { %v1228_v9 = vpack.c.bf16 %v1217_v6, %v1216_v47 }
 0x377   :  { %2431 = vmatprep.mubr.msk.bf16.mxu1 %vm1423_vm9, %v1228_v9 }
 0x378   :  { %1512 = vmatmul.mubr.bf16.gmra.mrb[40].mxu1 %v1227_v11 }
 0x37f   :  { %v2916_v59 = vpop.permute.xlu0 %2915 }
 0x380   :  { %v2918_v50 = vunpack.i.h.bf16 %v2916_v59  ;;  %v2917_v63 = vunpack.i.l.bf16 %v2916_v59 }
 0x381   :  { %v2921_v18 = vpop.permute.xlu1 %2920 }
 0x382   :  { %v2923_v20 = vunpack.i.h.bf16 %v2921_v18  ;;  %v2922_v39 = vunpack.i.l.bf16 %v2921_v18  ;;  %v1207_v60 = vsel %vm1198_vm8, %v3867_v49, %v2917_v63  ;;  %v1208_v32 = vsel %vm1198_vm8, %v3871_v2, %v2918_v50  ;;  %v3032_v49 = vld [vmem:[%s4219_s6 + $0x8] sm:$0xff]   ;;  %v3033_v2 = vld [vmem:[%s4219_s6 + $0x10] sm:$0xff]  }
 0x383   :  { %v1229_v41 = vpack.c.bf16 %v1208_v32, %v1207_v60  ;;  %1751 = vmatpush1.bf16.msra.mxu0 %v3032_v49 }
 0x384   :  { %v1219_v16 = vsel %vm284_vm1, %v2918_v50, %v2923_v20  ;;  %v1218_v4 = vsel %vm284_vm1, %v2917_v63, %v2922_v39  ;;  %1752 = vmatprep.subr.bf16.mxu0 %v3085_v3 }
 0x385   :  { %v1230_v43 = vpack.c.bf16 %v1219_v16, %v1218_v4 }
 0x387   :  { %2432 = vmatprep.mubr.msk.bf16.mxu1 %vm1423_vm9, %v1230_v43  ;;  %1753 = vmatpush1.bf16.msra.mxu0 %v3033_v2 }
 0x388   :  { %1522 = vmatmul.mubr.bf16.gmra.mrb[44].mxu1 %v1229_v41  ;;  %1754 = vmatprep.subr.bf16.mxu0 %v3085_v3 }
 0x38b   :  { %1755 = vmatpush1.bf16.msra.mxu0 %v3034_v26 }
 0x38c   :  { %1756 = vmatprep.subr.bf16.mxu0 %v3085_v3 }
 0x38f   :  { %1757 = vmatpush1.bf16.msra.mxu0 %v3035_v30 }
 0x390   :  { %1758 = vmatprep.subr.bf16.mxu0 %v3085_v3 }
 0x393   :  { %1759 = vmatpush1.bf16.msra.mxu0 %v3036_v48 }
 0x394   :  { %1760 = vmatprep.subr.bf16.mxu0 %v3085_v3 }
 0x397   :  { %1761 = vmatpush1.bf16.msra.mxu0 %v3037_v44 }
 0x398   :  { %1762 = vmatprep.subr.bf16.mxu0 %v3085_v3 }
 0x39b   :  { %1763 = vmatpush1.bf16.msra.mxu0 %v3038_v34 }
 0x39c   :  { %1764 = vmatprep.subr.bf16.mxu0 %v3085_v3 }
 0x39f   :  { %1765 = vmatpush1.bf16.msra.mxu0 %v3039_v27 }
 0x3a0   :  { %1766 = vmatprep.subr.bf16.mxu0 %v3085_v3 }
 0x3a3   :  { %1767 = vmatpush1.bf16.msra.mxu0 %v3040_v53 }
 0x3a4   :  { %1768 = vmatprep.subr.bf16.mxu0 %v3085_v3 }
 0x3a7   :  { %1769 = vmatpush1.bf16.msra.mxu0 %v3041_v42 }
 0x3a8   :  { %2083 = vmatprep.subr.bf16.mxu0 %v3085_v3 }
 0x41b   :  { %v1483_v23 = vpop.f32.mrb[28].mxu1 }
 0x41c   :  { %v1484_v33 = vadd.f32 %v1483_v23, %v3961_v37  ;;  %v1485_v51 = vpop.f32.mrb[29].mxu1 }
 0x41d   :  { %v1486_v15 = vadd.f32 %v1485_v51, %v3965_v38  ;;  %v1487_v40 = vpop.f32.mrb[30].mxu1 }
 0x41e   :  { %v1488_v17 = vadd.f32 %v1487_v40, %v3961_v37  ;;  %v1489_v13 = vpop.f32.mrb[31].mxu1  ;;  %v1538_v45 = vmax.f32 %v1484_v33, 0.0 }
 0x41f   :  { %v1490_v54 = vadd.f32 %v1489_v13, %v3965_v38  ;;  %v1539_v24 = vmax.f32 %v1486_v15, 0.0 }
 0x420   :  { %v1540_v61 = vmax.f32 %v1488_v17, 0.0 }
 0x421   :  { %v1541_v46 = vmax.f32 %v1490_v54, 0.0 }
 0x422   :  { %v3971_v36 = vmax.f32 %v1538_v45, %v1540_v61 }
 0x423   :  { %v3973_v21 = vmax.f32 %v1539_v24, %v1541_v46 }
 0x42b   :  { %v1493_v7 = vpop.f32.mrb[32].mxu1 }
 0x42c   :  { %v1494_v14 = vadd.f32 %v1493_v7, %v3961_v37  ;;  %v1495_v31 = vpop.f32.mrb[33].mxu1 }
 0x42d   :  { %v1496_v57 = vadd.f32 %v1495_v31, %v3965_v38  ;;  %v1497_v25 = vpop.f32.mrb[34].mxu1 }
 0x42e   :  { %v1498_v62 = vadd.f32 %v1497_v25, %v3961_v37  ;;  %v1499_v55 = vpop.f32.mrb[35].mxu1  ;;  %v1542_v0 = vmax.f32 %v1494_v14, 0.0 }
 0x42f   :  { %v1500_v56 = vadd.f32 %v1499_v55, %v3965_v38  ;;  %v1543_v12 = vmax.f32 %v1496_v57, 0.0 }
 0x430   :  { %v1544_v52 = vmax.f32 %v1498_v62, 0.0 }
 0x431   :  { %v1545_v58 = vmax.f32 %v1500_v56, 0.0 }
 0x432   :  { %v3990_v1 = vmax.f32 %v1542_v0, %v1544_v52 }
 0x433   :  { %v3992_v29 = vmax.f32 %v1543_v12, %v1545_v58 }
 0x434   :  { %v2924_v28 = vpack.i.bf16 %v3990_v1, %v3971_v36 }
 0x435   :  { %v2929_v19 = vpack.i.bf16 %v3992_v29, %v3973_v21 }
 0x436   :  { %2925 = vrot.lane.b32.xlu1 %v2924_v28, %s3091_s21 }
 0x437   :  { %2930 = vrot.lane.b32.xlu0 %v2929_v19, %s3089_s30 }
 0x43b   :  { %v1503_v11 = vpop.f32.mrb[36].mxu1  ;;  %2935 = vrot.lane.b32.xlu0 %v2924_v28, %s3089_s30 }
 0x43c   :  { %v1504_v6 = vadd.f32 %v1503_v11, %v3961_v37  ;;  %v1505_v47 = vpop.f32.mrb[37].mxu1 }
 0x43d   :  { %v1506_v9 = vadd.f32 %v1505_v47, %v3965_v38  ;;  %v1507_v59 = vpop.f32.mrb[38].mxu1 }
 0x43e   :  { %v1508_v50 = vadd.f32 %v1507_v59, %v3961_v37  ;;  %v1509_v63 = vpop.f32.mrb[39].mxu1  ;;  %v1546_v20 = vmax.f32 %v1504_v6, 0.0 }
 0x43f   :  { %v1510_v18 = vadd.f32 %v1509_v63, %v3965_v38  ;;  %v1547_v60 = vmax.f32 %v1506_v9, 0.0 }
 0x440   :  { %v1548_v39 = vmax.f32 %v1508_v50, 0.0 }
 0x441   :  { %v1549_v32 = vmax.f32 %v1510_v18, 0.0 }
 0x442   :  { %v4006_v41 = vmax.f32 %v1546_v20, %v1548_v39 }
 0x443   :  { %v4008_v16 = vmax.f32 %v1547_v60, %v1549_v32 }
 0x44b   :  { %v1513_v4 = vpop.f32.mrb[40].mxu1 }
 0x44c   :  { %v1514_v43 = vadd.f32 %v1513_v4, %v3961_v37  ;;  %v1515_v8 = vpop.f32.mrb[41].mxu1 }
 0x44d   :  { %v1516_v49 = vadd.f32 %v1515_v8, %v3965_v38  ;;  %v1517_v2 = vpop.f32.mrb[42].mxu1 }
 0x44e   :  { %v1518_v26 = vadd.f32 %v1517_v2, %v3961_v37  ;;  %v1519_v30 = vpop.f32.mrb[43].mxu1  ;;  %v1550_v44 = vmax.f32 %v1514_v43, 0.0 }
 0x44f   :  { %v1520_v48 = vadd.f32 %v1519_v30, %v3965_v38  ;;  %v1551_v35 = vmax.f32 %v1516_v49, 0.0 }
 0x450   :  { %v1552_v34 = vmax.f32 %v1518_v26, 0.0 }
 0x451   :  { %v1553_v23 = vmax.f32 %v1520_v48, 0.0 }
 0x452   :  { %v4014_v33 = vmax.f32 %v1550_v44, %v1552_v34 }
 0x453   :  { %v1565_v51 = vmax.f32 %v1551_v35, %v1553_v23 }
 0x454   :  { %v2939_v15 = vpack.i.bf16 %v4014_v33, %v4006_v41 }
 0x455   :  { %v2944_v40 = vpack.i.bf16 %v1565_v51, %v4008_v16 }
 0x456   :  { %2940 = vrot.lane.b32.xlu0 %v2939_v15, %s3091_s21 }
 0x457   :  { %2945 = vrot.lane.b32.xlu1 %v2944_v40, %s3089_s30 }
 0x45b   :  { %v1523_v17 = vpop.f32.mrb[44].mxu1  ;;  %2950 = vrot.lane.b32.xlu1 %v2939_v15, %s3089_s30 }
 0x45c   :  { %v1524_v13 = vadd.f32 %v1523_v17, %v3961_v37  ;;  %v1525_v54 = vpop.f32.mrb[45].mxu1 }
 0x45d   :  { %v1526_v45 = vadd.f32 %v1525_v54, %v3965_v38  ;;  %v1527_v61 = vpop.f32.mrb[46].mxu1 }
 0x45e   :  { %v1528_v24 = vadd.f32 %v1527_v61, %v3961_v37  ;;  %v1529_v46 = vpop.f32.mrb[47].mxu1  ;;  %v1554_v7 = vmax.f32 %v1524_v13, 0.0 }
 0x45f   :  { %v1530_v27 = vadd.f32 %v1529_v46, %v3965_v38  ;;  %v1555_v31 = vmax.f32 %v1526_v45, 0.0 }
 0x460   :  { %v1556_v14 = vmax.f32 %v1528_v24, 0.0 }
 0x461   :  { %v1557_v53 = vmax.f32 %v1530_v27, 0.0  ;;  %v3042_v27 = vld [vmem:[%s4221_s7 + $0x40] sm:$0xff]  }
 0x462   :  { %v1566_v57 = vmax.f32 %v1554_v7, %v1556_v14  ;;  %2562 = vmatprep.subr.bf16.mxu1 %v3042_v27  ;;  %v3044_v7 = vld [vmem:[%s4221_s7 + $0x48] sm:$0xff]  }
 0x463   :  { %v1567_v25 = vmax.f32 %v1555_v31, %v1557_v53  ;;  %v3045_v14 = vld [vmem:[%s4221_s7 + $0x8] sm:$0xff]   ;;  %v3046_v31 = vld [vmem:[%s4221_s7 + $0x50] sm:$0xff]  }
 0x464   :  { %1621 = vrot.lane.b32.xlu1 %v1566_v57, %s3091_s21  ;;  %v3047_v53 = vld [vmem:[%s4221_s7 + $0x10] sm:$0xff]   ;;  %v3076_v27 = vld [vmem:[%s4223_s11 + $0x8] sm:$0xff]  }
 0x465   :  { %v2954_v62 = vpack.i.bf16 %v1566_v57, %v1567_v25 }
 0x467   :  { %2955 = vrot.lane.b32.xlu0 %v2954_v62, %s3089_s30  ;;  %v3049_v62 = vld [vmem:[%s4221_s7 + $0x18] sm:$0xff]  }
 0x468   :  { %1185 = vrot.lane.b32.xlu1 %v3887_v5, %s3086_s16 }
 0x46b   :  { %1151 = vrot.lane.b32.xlu0 %v3881_v22, %s3090_s18  ;;  %s3093_s18 = smov 32  }
 0x4a8   :  { %v2926_v37 = vpop.permute.xlu1 %2925 }
 0x4a9   :  { %v2928_v55 = vunpack.i.h.bf16 %v2926_v37  ;;  %v2927_v38 = vunpack.i.l.bf16 %v2926_v37  ;;  %v2931_v56 = vpop.permute.xlu0 %2930  ;;  %v3051_v37 = vld [vmem:[%s4221_s7 + $0x88] sm:$0xff]  }
 0x4aa   :  { %v2933_v0 = vunpack.i.h.bf16 %v2931_v56  ;;  %v2932_v52 = vunpack.i.l.bf16 %v2931_v56  ;;  %v3054_v56 = vld [vmem:[%s4221_s7 + $0x90] sm:$0xff]  }
 0x4ac   :  { %v1629_v42 = vsel %vm1628_vm10, %v2932_v52, %v2927_v38  ;;  %v1630_v12 = vsel %vm1628_vm10, %v2933_v0, %v2928_v55  ;;  %v3052_v55 = vld [vmem:[%s4221_s7 + $0x60] sm:$0xff]  }
 0x4ad   :  { %v1635_v58 = vmax.f32 %v3973_v21, %v1629_v42  ;;  %v1637_v28 = vmax.f32 %v3992_v29, %v1630_v12  ;;  %v2936_v19 = vpop.permute.xlu0 %2935  ;;  %v3053_v38 = vld [vmem:[%s4221_s7 + $0x20] sm:$0xff]  }
 0x4ae   :  { %v2938_v5 = vunpack.i.h.bf16 %v2936_v19  ;;  %v2937_v11 = vunpack.i.l.bf16 %v2936_v19 }
 0x4af   :  { %v1645_v22 = vpack.c.bf16 %v1637_v28, %v1635_v58  ;;  %v3056_v58 = vld [vmem:[%s4221_s7 + $0x28] sm:$0xff]   ;;  %v3057_v28 = vld [vmem:[%s4221_s7 + $0x98] sm:$0xff]  }
 0x4b0   :  { %v1599_v6 = vsel %vm795_vm6, %v2938_v5, %v2933_v0  ;;  %v1598_v47 = vsel %vm795_vm6, %v2937_v11, %v2932_v52  ;;  %v3055_v0 = vld [vmem:[%s4221_s7 + $0x68] sm:$0xff]   ;;  %v3059_v5 = vld [vmem:[%s4221_s7 + $0x70] sm:$0xff]   ;;  %v3058_v11 = vld [vmem:[%s4221_s7 + $0xa0] sm:$0xff]  }
 0x4b1   :  { %v1636_v9 = vmax.f32 %v3990_v1, %v1599_v6  ;;  %v1634_v59 = vmax.f32 %v3971_v36, %v1598_v47  ;;  %2445 = vmatprep.mubr.msk.bf16.mxu0 %vm1738_vm11, %v1645_v22  ;;  %v3060_v22 = vld [vmem:[%s4221_s7 + $0x30] sm:$0xff]   ;;  %v3061_v6 = vld [vmem:[%s4221_s7 + $0xa8] sm:$0xff]   ;;  %v3062_v47 = vld [vmem:[%s4221_s7 + $0x78] sm:$0xff]  }
 0x4b3   :  { %v1644_v50 = vpack.c.bf16 %v1636_v9, %v1634_v59  ;;  %v3063_v9 = vld [vmem:[%s4221_s7 + $0x38] sm:$0xff]   ;;  %v3064_v59 = vld [vmem:[%s4221_s7 + $0xb0] sm:$0xff]  }
 0x4b5   :  { %1781 = vmatmul.mubr.bf16.vlgmr.msra.gmra.mrb[52].mxu0 %v1644_v50  ;;  %v3065_v50 = vld [vmem:[%s4221_s7 + $0xb8] sm:$0xff]  }
 0x4c8   :  { %v2941_v21 = vpop.permute.xlu0 %2940 }
 0x4c9   :  { %v2943_v63 = vunpack.i.h.bf16 %v2941_v21  ;;  %v2942_v29 = vunpack.i.l.bf16 %v2941_v21  ;;  %v2946_v18 = vpop.permute.xlu1 %2945  ;;  %v3066_v21 = vld [vmem:[%s4221_s7 + $0xc0] sm:$0xff]  }
 0x4ca   :  { %v2948_v20 = vunpack.i.h.bf16 %v2946_v18  ;;  %v2947_v39 = vunpack.i.l.bf16 %v2946_v18 }
 0x4cc   :  { %v1632_v60 = vsel %vm1628_vm10, %v2948_v20, %v2943_v63  ;;  %v1631_v32 = vsel %vm1628_vm10, %v2947_v39, %v2942_v29 }
 0x4cd   :  { %v1641_v4 = vmax.f32 %v1565_v51, %v1632_v60  ;;  %v1639_v43 = vmax.f32 %v4008_v16, %v1631_v32  ;;  %v2951_v1 = vpop.permute.xlu1 %2950 }
 0x4ce   :  { %v2953_v8 = vunpack.i.h.bf16 %v2951_v1  ;;  %v2952_v36 = vunpack.i.l.bf16 %v2951_v1 }
 0x4cf   :  { %v1647_v49 = vpack.c.bf16 %v1641_v4, %v1639_v43 }
 0x4d0   :  { %v1600_v2 = vsel %vm795_vm6, %v2952_v36, %v2947_v39  ;;  %v1601_v26 = vsel %vm795_vm6, %v2953_v8, %v2948_v20  ;;  %v3095_v39 = vmov 0.0  }
 0x4d1   :  { %2446 = vmatprep.mubr.msk.bf16.mxu0 %vm1738_vm11, %v1647_v49  ;;  %v1638_v30 = vmax.f32 %v4006_v41, %v1600_v2  ;;  %v1640_v48 = vmax.f32 %v4014_v33, %v1601_v26 }
 0x4d3   :  { %v1646_v44 = vpack.c.bf16 %v1640_v48, %v1638_v30 }
 0x4d5   :  { %1789 = vmatmul.mubr.bf16.gmra.mrb[56].mxu0 %v1646_v44 }
 0x4d6   :  { %v1622_v34 = vpop.permute.xlu1 %1621 }
 0x4d9   :  { %v2956_v35 = vpop.permute.xlu0 %2955 }
 0x4da   :  { %v2958_v23 = vunpack.i.h.bf16 %v2956_v35  ;;  %v2957_v16 = vunpack.i.l.bf16 %v2956_v35  ;;  %v1186_v17 = vpop.permute.xlu1 %1185  ;;  %v3067_v35 = vld [vmem:[%s4222_s9] sm:$0xff]  }
 0x4dc   :  { %v1633_v51 = vsel %vm1628_vm10, %v2957_v16, %v1622_v34  ;;  %v1602_v15 = vsel %vm795_vm6, %v2958_v23, %v2957_v16  ;;  %v3068_v16 = vld [vmem:[%s4222_s9 + $0x8] sm:$0xff]  }
 0x4dd   :  { %v1643_v40 = vmax.f32 %v1567_v25, %v1633_v51  ;;  %v1152_v13 = vpop.permute.xlu0 %1151  ;;  %v1642_v54 = vmax.f32 %v1566_v57, %v1602_v15  ;;  %v3048_v57 = vld [vmem:[%s4221_s7 + $0x58] sm:$0xff]   ;;  %v3050_v25 = vld [vmem:[%s4221_s7 + $0x80] sm:$0xff]   ;;  %v3069_v51 = vld [vmem:[%s4222_s9 + $0x10] sm:$0xff]  }
 0x4de   :  { %v1209_v45 = vsel %vm1198_vm8, %v3877_v10, %v1152_v13  ;;  %v1220_v41 = vsel %vm284_vm1, %v1152_v13, %v1186_v17  ;;  %v3043_v10 = vld [vmem:[%s4221_s7] sm:$0xff]   ;;  %2084 = vmatpush1.bf16.msra.mxu0 %v3050_v25  ;;  %vm2039_vm1 = vcmask 130048  }
 0x4df   :  { %v1231_v33 = vpack.c.bf16 %v1209_v45, %v1209_v45  ;;  %v1232_v61 = vpack.c.bf16 %v1220_v41, %v1220_v41  ;;  %v1649_v24 = vpack.c.bf16 %v1643_v40, %v1643_v40  ;;  %v1648_v46 = vpack.c.bf16 %v1642_v54, %v1642_v54  ;;  %2563 = vmatpush3.bf16.msra.mxu1 %v3043_v10  ;;  %v3070_v54 = vld [vmem:[%s4222_s9 + $0x18] sm:$0xff]   ;;  %v3071_v45 = vld [vmem:[%s4222_s9 + $0x20] sm:$0xff]   ;;  %v3072_v41 = vld [vmem:[%s4222_s9 + $0x28] sm:$0xff]  }
 0x4e0   :  { %2564 = vmatprep.subr.bf16.mxu1 %v3044_v7  ;;  %2085 = vmatprep.subr.bf16.mxu0 %v3085_v3  ;;  %v3077_v10 = vld [vmem:[%s4223_s11 + $0x10] sm:$0xff]   ;;  %v3078_v7 = vld [vmem:[%s4223_s11 + $0x18] sm:$0xff]  }
 0x4e1   :  { %2433 = vmatprep.mubr.msk.bf16.mxu1 %vm1423_vm9, %v1232_v61  ;;  %2447 = vmatprep.mubr.msk.bf16.mxu0 %vm1738_vm11, %v1649_v24  ;;  %v3074_v61 = vld [vmem:[%s4222_s9 + $0x38] ss:$0 sps:$4 sm:$0xff]  }
 0x4e2   :  { %1532 = vmatmul.mubr.bf16.gmra.mrb[48].mxu1 %v1231_v33  ;;  %1797 = vmatmul.mubr.bf16.gmra.mrb[60].mxu0 %v1648_v46  ;;  %v3073_v33 = vld [vmem:[%s4222_s9 + $0x30] sm:$0xff]   ;;  %v2198_v24 = vsel %vm2196_vm2, %v3074_v61, 0  ;;  %v3075_v46 = vld [vmem:[%s4223_s11] sm:$0xff]  }
 0x4e3   :  { %2565 = vmatpush3.bf16.msra.mxu1 %v3045_v14  ;;  %2086 = vmatpush1.bf16.msra.mxu0 %v3051_v37 }
 0x4e4   :  { %2566 = vmatprep.subr.bf16.mxu1 %v3046_v31  ;;  %2087 = vmatprep.subr.bf16.mxu0 %v3085_v3 }
 0x4e7   :  { %2567 = vmatpush3.bf16.msra.mxu1 %v3047_v53  ;;  %2088 = vmatpush1.bf16.msra.mxu0 %v3054_v56 }
 0x4e8   :  { %2568 = vmatprep.subr.bf16.mxu1 %v3048_v57  ;;  %2089 = vmatprep.subr.bf16.mxu0 %v3085_v3 }
 0x4eb   :  { %2569 = vmatpush3.bf16.msra.mxu1 %v3049_v62  ;;  %2090 = vmatpush1.bf16.msra.mxu0 %v3057_v28  ;;  %v2448_v62 = vld [vmem:[%s4224_s8] ss:$0 sm:$0xff]  ;;  %v3080_v28 = vld [vmem:[%s4223_s11 + $0x28] ss:$0 sps:$4 sm:$0x33]  }
 0x4ec   :  { %2570 = vmatprep.subr.bf16.mxu1 %v3052_v55  ;;  %2091 = vmatprep.subr.bf16.mxu0 %v3085_v3 }
 0x4ef   :  { %2571 = vmatpush3.bf16.msra.mxu1 %v3053_v38  ;;  %2092 = vmatpush1.bf16.msra.mxu0 %v3058_v11 }
 0x4f0   :  { %2572 = vmatprep.subr.bf16.mxu1 %v3055_v0  ;;  %2093 = vmatprep.subr.bf16.mxu0 %v3085_v3 }
 0x4f3   :  { %2573 = vmatpush3.bf16.msra.mxu1 %v3056_v58  ;;  %2094 = vmatpush1.bf16.msra.mxu0 %v3061_v6  ;;  %v3079_v58 = vld [vmem:[%s4223_s11 + $0x20] sm:$0xff]  }
 0x4f4   :  { %2574 = vmatprep.subr.bf16.mxu1 %v3059_v5  ;;  %2095 = vmatprep.subr.bf16.mxu0 %v3085_v3  ;;  %v2475_v5 = vld [vmem:[%s4225_s10] ss:$0 sm:$0xff] }
 0x4f7   :  { %2575 = vmatpush3.bf16.msra.mxu1 %v3060_v22  ;;  %2096 = vmatpush1.bf16.msra.mxu0 %v3064_v59 }
 0x4f8   :  { %2576 = vmatprep.subr.bf16.mxu1 %v3062_v47  ;;  %2097 = vmatprep.subr.bf16.mxu0 %v3085_v3 }
 0x4fb   :  { %2577 = vmatpush3.bf16.msra.mxu1 %v3063_v9  ;;  %2098 = vmatpush1.bf16.msra.mxu0 %v3065_v50 }
 0x4fc   :  { %2099 = vmatprep.subr.bf16.mxu0 %v3085_v3  ;;  %2600 = vmatprep.subr.bf16.mxu1 %v3095_v39 }
 0x4ff   :  { %2100 = vmatpush1.bf16.msra.mxu0 %v3066_v21  ;;  %v2485_v21 = vld [vmem:[%s4226_s12] ss:$0 sm:$0xff] }
 0x500   :  { %2620 = vmatprep.subr.bf16.mxu0 %v3095_v39 }
 0x588   :  { %v4100_v52 = vpop.f32.mrb[52].mxu0 }
 0x589   :  { %v1784_v42 = vpop.f32.mrb[53].mxu0 }
 0x58a   :  { %v1785_v12 = vpop.f32.mrb[54].mxu0 }
 0x58b   :  { %1805 = vrot.lane.b32.xlu0 %v1785_v12, %s3092_s25  ;;  %v1787_v19 = vpop.f32.mrb[55].mxu0 }
 0x58c   :  { %v2297_v19 = vsel %vm469_vm0, %v3080_v28, 0 }
 0x5a8   :  { %v1790_v63 = vpop.f32.mrb[56].mxu0 }
 0x5a9   :  { %1809 = vrot.lane.b32.xlu1 %v1790_v63, %s3093_s18  ;;  %v1792_v29 = vpop.f32.mrb[57].mxu0 }
 0x5aa   :  { %v1793_v18 = vpop.f32.mrb[58].mxu0 }
 0x5ab   :  { %1813 = vrot.lane.b32.xlu0 %v1793_v18, %s3094_s22  ;;  %v1795_v20 = vpop.f32.mrb[59].mxu0 }
 0x5b5   :  { %v1533_v60 = vpop.f32.mrb[48].mxu1  ;;  %v1798_v3 = vpop.f32.mrb[60].mxu0 }
 0x5b6   :  { %v1534_v32 = vpop.f32.mrb[49].mxu1  ;;  %1817 = vrot.lane.b32.xlu1 %v1798_v3, %s3096_s23  ;;  %v1800_v4 = vpop.f32.mrb[61].mxu0 }
 0x5b7   :  { %v1535_v43 = vpop.f32.mrb[50].mxu1  ;;  %v1801_v1 = vpop.f32.mrb[62].mxu0 }
 0x5b8   :  { %v1536_v8 = vpop.f32.mrb[51].mxu1  ;;  %v1802_v36 = vpop.f32.mrb[63].mxu0 }
 0x5fd   :  { %v1806_v49 = vpop.permute.xlu0 %1805 }
 0x5fe   :  { %v1821_v30 = vsel %vm1820_vm13, %v4100_v52, %v1806_v49 }
 0x5ff   :  { %v1828_v23 = vpack.c.bf16 %v1821_v30, %v1821_v30 }
 0x61b   :  { %v1810_v2 = vpop.permute.xlu1 %1809 }
 0x61c   :  { %v1823_v26 = vsel %vm1822_vm12, %v1806_v49, %v1810_v2 }
 0x61d   :  { %v1814_v48 = vpop.permute.xlu0 %1813 }
 0x61e   :  { %v1825_v44 = vsel %vm1824_vm14, %v1823_v26, %v1814_v48 }
 0x61f   :  { %v1829_v34 = vpack.c.bf16 %v1825_v44, %v1825_v44 }
 0x621   :  { %2075 = vmatprep.mubr.bf16.mxu1 %v1829_v34 }
 0x622   :  { %2076 = vmatmul.mubr.bf16.vlgmr.msra.gmra.mrb[52].mxu1 %v1828_v23 }
 0x623   :  { %2601 = vmatpush3.bf16.msra.mxu1 %v3067_v35  ;;  %2616 = vmatprep.mubr.msk.bf16.mxu1 %vm3097_vm4, %v3095_v39 }
 0x624   :  { %2602 = vmatprep.subr.bf16.mxu1 %v3095_v39 }
 0x627   :  { %2603 = vmatpush3.bf16.msra.mxu1 %v3068_v16 }
 0x628   :  { %v1818_v15 = vpop.permute.xlu1 %1817  ;;  %2604 = vmatprep.subr.bf16.mxu1 %v3095_v39 }
 0x629   :  { %v1827_v40 = vsel %vm1826_vm15, %v1814_v48, %v1818_v15  ;;  %v1831_v17 = vpack.c.bf16 %v1818_v15, %v1818_v15 }
 0x62a   :  { %v1830_v13 = vpack.c.bf16 %v1827_v40, %v1827_v40 }
 0x62b   :  { %2474 = vmatprep.mubr.msk.bf16.mxu0 %vm2039_vm1, %v1831_v17  ;;  %2605 = vmatpush3.bf16.msra.mxu1 %v3069_v51 }
 0x62c   :  { %2116 = vmatmul.mubr.bf16.vlgmr.msra.gmra.mrb[64].mxu0 %v1830_v13  ;;  %2606 = vmatprep.subr.bf16.mxu1 %v3095_v39 }
 0x62d   :  { %2632 = vmatprep.mubr.msk.bf16.mxu0 %vm3097_vm4, %v3095_v39  ;;  %2621 = vmatpush3.bf16.msra.mxu0 %v3075_v46 }
 0x62e   :  { %2622 = vmatprep.subr.bf16.mxu0 %v3095_v39 }
 0x62f   :  { %2607 = vmatpush3.bf16.msra.mxu1 %v3070_v54 }
 0x630   :  { %2608 = vmatprep.subr.bf16.mxu1 %v3095_v39 }
 0x631   :  { %2623 = vmatpush3.bf16.msra.mxu0 %v3076_v27 }
 0x632   :  { %2624 = vmatprep.subr.bf16.mxu0 %v3095_v39 }
 0x633   :  { %2609 = vmatpush3.bf16.msra.mxu1 %v3071_v45 }
 0x634   :  { %2610 = vmatprep.subr.bf16.mxu1 %v3095_v39 }
 0x635   :  { %2625 = vmatpush3.bf16.msra.mxu0 %v3077_v10 }
 0x636   :  { %2626 = vmatprep.subr.bf16.mxu0 %v3095_v39 }
 0x637   :  { %2611 = vmatpush3.bf16.msra.mxu1 %v3072_v41 }
 0x638   :  { %2612 = vmatprep.subr.bf16.mxu1 %v3095_v39 }
 0x639   :  { %2627 = vmatpush3.bf16.msra.mxu0 %v3078_v7 }
 0x63a   :  { %2628 = vmatprep.subr.bf16.mxu0 %v3095_v39 }
 0x63b   :  { %2613 = vmatpush3.bf16.msra.mxu1 %v3073_v33 }
 0x63c   :  { %2614 = vmatprep.subr.bf16.mxu1 %v3095_v39 }
 0x63d   :  { %2629 = vmatpush3.bf16.msra.mxu0 %v3079_v58 }
 0x63e   :  { %2630 = vmatprep.subr.bf16.mxu0 %v3095_v39 }
 0x63f   :  { %2615 = vmatpush3.bf16.msra.mxu1 %v2198_v24 }
 0x641   :  { %2631 = vmatpush3.bf16.msra.mxu0 %v2297_v19 }
 0x6f5   :  { %v2578_v14 = vpop.f32.mrb[52].mxu1 }
 0x6f6   :  { %v2579_v31 = vpop.f32.mrb[53].mxu1 }
 0x6f7   :  { %v2580_v53 = vadd.f32 %v2579_v31, %v2578_v14  ;;  %v2581_v57 = vpop.f32.mrb[54].mxu1 }
 0x6f8   :  { %v2582_v25 = vpop.f32.mrb[55].mxu1 }
 0x6f9   :  { %v2078_v37 = vadd.f32 %v2580_v53, %v2448_v62 }
 0x6ff   :  { %v2117_v55 = vpop.f32.mrb[64].mxu0 }
 0x700   :  { %v2118_v38 = vadd.f32 %v2117_v55, %v2078_v37  ;;  %v2119_v56 = vpop.f32.mrb[65].mxu0 }
 0x701   :  { %v2120_v0 = vpop.f32.mrb[66].mxu0 }
 0x702   :  { %v2123_v52 = vmax.f32 %v2118_v38, 0.0  ;;  %v2121_v42 = vpop.f32.mrb[67].mxu0 }
 0x704   :  { %v2124_v12 = vpack.c.bf16 %v2123_v52, %v2123_v52 }
 0x706   :  { %2617 = vmatmul.mubr.msk.bf16.vlgmr.msra.gmra.mrb[56].mxu1 %vm2192_vm5, %v2124_v12 }
 0x7d9   :  { %v2234_v11 = vpop.f32.mrb[56].mxu1 }
 0x7da   :  { %v2235_v22 = vadd.f32 %v2475_v5, %v2234_v11  ;;  %v2618_v6 = vpop.f32.mrb[57].mxu1 }
 0x7db   :  { %v2237_v47 = vpop.f32.mrb[58].mxu1 }
 0x7dc   :  { %v2240_v9 = vmax.f32 %v2235_v22, 0.0  ;;  %v2619_v59 = vpop.f32.mrb[59].mxu1 }
 0x7de   :  { %v2241_v50 = vpack.c.bf16 %v2240_v9, %v2240_v9 }
 0x7e0   :  { %2633 = vmatmul.mubr.msk.bf16.vlgmr.msra.gmra.mrb[68].mxu0 %vm429_vm3, %v2241_v50 }
 0x8b3   :  { %v2333_v63 = vpop.f32.mrb[68].mxu0 }
 0x8b4   :  { %v2334_v29 = vadd.f32 %v2485_v21, %v2333_v63  ;;  %v2634_v18 = vpop.f32.mrb[69].mxu0 }
 0x8b5   :  { %v2336_v20 = vpop.f32.mrb[70].mxu0 }
 0x8b6   :  { %2339 = vmax.xlane.f32.xlu0 %v2334_v29  ;;  %v2635_v39 = vpop.f32.mrb[71].mxu0 }
 0x943   :  { %v2340_v60 = vpop.xlane.xlu0 %2339 }
 0x944   :  { %v2341_v3 = vsub.f32 %v2334_v29, %v2340_v60 }
 0x946   :  { %v2342_v32 = vmul.f32 1.442695, %v2341_v3 }
 0x948   :  { %3081 = vpow2.f32 %v2342_v32 }
 0x952   :  { %v3082_v4 = vpop.eup %3081 }
 0x953   :  { %2344 = vadd.xlane.f32.xlu1 %v3082_v4 }
 0x9e0   :  { %v2345_v43 = vpop.xlane.xlu1 %2344 }
 0x9e1   :  { %3083 = vlog2.f32 %v2345_v43 }
 0x9eb   :  { %v3084_v1 = vpop.eup %3083 }
 0x9ec   :  { %v2347_v8 = vmul.f32 0.6931472, %v3084_v1 }
 0x9ee   :  { %v2348_v36 = vsub.f32 %v2341_v3, %v2347_v8 }
 0x9f0   :  { %2349 = vst [vmem:[%s4227_s13] sm:$0xff] %v2348_v36 }

</bundles_post_ra>
